<compile_context>
chip_gen: v7x
topology: tpu7x:2x2x1
jax: 0.10.0
libtpu: 0.0.40
codegen_flags: <defaults>
</compile_context>

<pallas_src>
import jax
import jax.numpy as jnp
from jax import lax
from jax.experimental import pallas as pl
from jax.experimental.pallas import tpu as pltpu


# ----------------------------------------------------------------------------
# Pallas kernel: one LSTM layer over one (B_tile, t_chunk) block of the grid.
# ----------------------------------------------------------------------------
def _make_lstm_kernel(t_chunk, b_tile, hidden, act, unroll, mm_dtype):
    H = hidden

    def kernel(x_ref, wih_ref, whh_ref, b_ref, out_ref, pre_ref, h_ref, c_ref):
        # Reset recurrent state at the first T-chunk of each batch tile.
        @pl.when(pl.program_id(1) == 0)
        def _():
            h_ref[...] = jnp.zeros_like(h_ref)
            c_ref[...] = jnp.zeros_like(c_ref)

        # ---- Hoisted input projection (no sequential dependence) -----------
        # One (t_chunk*b_tile, D) x (D, 4H) MXU matmul for the whole chunk,
        # bias folded in once.
        d_in = x_ref.shape[-1]
        x_flat = x_ref[...].reshape(t_chunk * b_tile, d_in)
        pre_ref[...] = (
            jnp.dot(x_flat.astype(mm_dtype), wih_ref[...],
                    preferred_element_type=jnp.float32)
            + b_ref[...]
        )

        # ---- Recurrence: gates = pre[t] + h @ W_hh --------------------------
        def step(t, carry):
            row = pl.multiple_of(t * b_tile, b_tile)
            pre_t = pre_ref[pl.ds(row, b_tile), :]            # (b_tile, 4H)
            h = h_ref[...]                                    # (b_tile, H)
            gates = pre_t + jnp.dot(h.astype(mm_dtype), whh_ref[...],
                                    preferred_element_type=jnp.float32)
            i_g = jax.nn.sigmoid(gates[:, 0:H])
            f_g = jax.nn.sigmoid(gates[:, H:2 * H])
            g_g = jnp.tanh(gates[:, 2 * H:3 * H])
            o_g = jax.nn.sigmoid(gates[:, 3 * H:4 * H])
            c_new = f_g * c_ref[...] + i_g * g_g
            h_new = o_g * jnp.tanh(c_new)
            c_ref[...] = c_new
            h_ref[...] = h_new
            out_ref[t] = h_new
            return carry

        lax.fori_loop(0, t_chunk, step, 0, unroll=unroll)

        # ---- Fused output activation over the whole chunk -------------------
        if act == "relu":
            out_ref[...] = jnp.maximum(out_ref[...], 0.0)
        elif act == "sigmoid":
            out_ref[...] = jax.nn.sigmoid(out_ref[...])

    return kernel


# ----------------------------------------------------------------------------
# One nn.LSTM layer (time-major inside) + fused activation.
# ----------------------------------------------------------------------------
def _lstm_layer_pallas(x_tbd, w_ih, w_hh, b_ih, b_hh, act=None, *,
                       t_chunk, b_tile=8, mm_dtype=jnp.float32):
    """x_tbd: (T, B, D) f32, T % t_chunk == 0, B % b_tile == 0 (pre-padded).

    w_ih: (4H, D), w_hh: (4H, H), b_ih/b_hh: (4H,) in PyTorch layout
    (gate order i, f, g, o). Returns (T, B, H) f32.
    """
    T, B, D = x_tbd.shape
    H = w_hh.shape[1]
    assert T % t_chunk == 0 and B % b_tile == 0
    nT = T // t_chunk
    nB = B // b_tile
    unroll = t_chunk if t_chunk <= 8 else 8

    # Gate-concatenated kernel layout: columns ordered [i | f | g | o].
    wih_k = jnp.transpose(w_ih).astype(mm_dtype)            # (D, 4H)
    whh_k = jnp.transpose(w_hh).astype(mm_dtype)            # (H, 4H)
    b_k = (b_ih + b_hh).reshape(1, 4 * H).astype(jnp.float32)

    kernel = _make_lstm_kernel(t_chunk, b_tile, H, act, unroll, mm_dtype)

    grid_spec = pltpu.PrefetchScalarGridSpec(
        num_scalar_prefetch=0,
        grid=(nB, nT),
        in_specs=[
            pl.BlockSpec((t_chunk, b_tile, D), lambda b, t: (t, b, 0)),
            pl.BlockSpec((D, 4 * H), lambda b, t: (0, 0)),
            pl.BlockSpec((H, 4 * H), lambda b, t: (0, 0)),
            pl.BlockSpec((1, 4 * H), lambda b, t: (0, 0)),
        ],
        out_specs=pl.BlockSpec((t_chunk, b_tile, H), lambda b, t: (t, b, 0)),
        scratch_shapes=[
            pltpu.VMEM((t_chunk * b_tile, 4 * H), jnp.float32),  # hoisted x-proj
            pltpu.VMEM((b_tile, H), jnp.float32),                # h carry
            pltpu.VMEM((b_tile, H), jnp.float32),                # c carry
        ],
    )

    return pl.pallas_call(
        kernel,
        out_shape=jax.ShapeDtypeStruct((T, B, H), jnp.float32),
        grid_spec=grid_spec,
        compiler_params=pltpu.CompilerParams(
            dimension_semantics=("parallel", "arbitrary"),
            vmem_limit_bytes=32 * 1024 * 1024,
        ),
    )(x_tbd.astype(jnp.float32), wih_k, whh_k, b_k)


# ----------------------------------------------------------------------------
# LSTMAE forward (encoder LSTM + ReLU, decoder LSTM + Sigmoid).
# ----------------------------------------------------------------------------
def lstmae_forward(x_btd, params, *, t_chunk=None, mm_dtype=jnp.float32):
    """x_btd: (B, T, D) batch-first like PyTorch. Returns (B, T, D)."""
    B, T, D = x_btd.shape
    b_tile = 8
    if t_chunk is None:
        t_chunk = min(T, 128)
    B_pad = ((B + b_tile - 1) // b_tile) * b_tile
    T_pad = ((T + t_chunk - 1) // t_chunk) * t_chunk

    x = jnp.pad(x_btd.astype(jnp.float32),
                ((0, B_pad - B), (0, T_pad - T), (0, 0)))
    # Single boundary transpose to time-major; every stacked layer stays
    # time-major so there are no per-layer HBM transpose round trips.
    h = jnp.transpose(x, (1, 0, 2))                           # (T_pad, B_pad, D)

    enc = params["encoder"]
    for li, p in enumerate(enc):
        act = "relu" if li == len(enc) - 1 else None
        h = _lstm_layer_pallas(h, p["w_ih"], p["w_hh"], p["b_ih"], p["b_hh"],
                               act, t_chunk=t_chunk, b_tile=b_tile,
                               mm_dtype=mm_dtype)
    dec = params["decoder"]
    for li, p in enumerate(dec):
        act = "sigmoid" if li == len(dec) - 1 else None
        h = _lstm_layer_pallas(h, p["w_ih"], p["w_hh"], p["b_ih"], p["b_hh"],
                               act, t_chunk=t_chunk, b_tile=b_tile,
                               mm_dtype=mm_dtype)

    out = jnp.transpose(h, (1, 0, 2))                         # (B_pad, T_pad, H)
    return out[:B, :T, :]


# ----------------------------------------------------------------------------
# Pure-JAX reference (correctness check only).
# ----------------------------------------------------------------------------
def _lstm_layer_ref(x_btd, w_ih, w_hh, b_ih, b_hh):
    B, T, D = x_btd.shape
    H = w_hh.shape[1]

    def step(carry, x_t):
        h, c = carry
        gates = x_t @ w_ih.T + h @ w_hh.T + b_ih + b_hh
        i, f, g, o = jnp.split(gates, 4, axis=-1)
        i = jax.nn.sigmoid(i)
        f = jax.nn.sigmoid(f)
        g = jnp.tanh(g)
        o = jax.nn.sigmoid(o)
        c = f * c + i * g
        h = o * jnp.tanh(c)
        return (h, c), h

    h0 = jnp.zeros((B, H), jnp.float32)
    c0 = jnp.zeros((B, H), jnp.float32)
    (_, _), ys = lax.scan(step, (h0, c0), jnp.swapaxes(x_btd, 0, 1))
    return jnp.swapaxes(ys, 0, 1)


def lstmae_forward_ref(x_btd, params):
    h = x_btd
    for p in params["encoder"]:
        h = _lstm_layer_ref(h, p["w_ih"], p["w_hh"], p["b_ih"], p["b_hh"])
    h = jnp.maximum(h, 0.0)
    for p in params["decoder"]:
        h = _lstm_layer_ref(h, p["w_ih"], p["w_hh"], p["b_ih"], p["b_hh"])
    return jax.nn.sigmoid(h)


# ----------------------------------------------------------------------------
# Deterministic parameter construction (matches nn.LSTM shapes / module init).
# ----------------------------------------------------------------------------
def _xavier_uniform(key, shape, gain):
    fan_out, fan_in = shape
    bound = gain * jnp.sqrt(6.0 / (fan_in + fan_out))
    return jax.random.uniform(key, shape, jnp.float32, -bound, bound)


def _make_lstm_params(key, input_size, hidden_size):
    k1, k2, k3, k4 = jax.random.split(key, 4)
    gain = jnp.sqrt(2.0)
    bound = 1.0 / jnp.sqrt(hidden_size)
    return {
        "w_ih": _xavier_uniform(k1, (4 * hidden_size, input_size), gain),
        "w_hh": _xavier_uniform(k2, (4 * hidden_size, hidden_size), gain),
        "b_ih": jax.random.uniform(k3, (4 * hidden_size,), jnp.float32, -bound, bound),
        "b_hh": jax.random.uniform(k4, (4 * hidden_size,), jnp.float32, -bound, bound),
    }


def make_lstmae_params(key, input_size, hidden_size, num_layers=1):
    # TODO(synk): bidirectional=True branch of EncoderRNN not implemented (default is False).
    keys = jax.random.split(key, 2 * num_layers)
    enc, dec = [], []
    for l in range(num_layers):
        enc_in = input_size if l == 0 else hidden_size
        enc.append(_make_lstm_params(keys[2 * l], enc_in, hidden_size))
        dec_in = hidden_size if l == 0 else input_size
        dec.append(_make_lstm_params(keys[2 * l + 1], dec_in, input_size))
    return {"encoder": enc, "decoder": dec}


if __name__ == "__main__":
    B, T = 2, 8
    input_size, hidden_size, num_layers = 16, 32, 1

    key = jax.random.PRNGKey(0)
    k_x, k_p = jax.random.split(key)
    x = jax.random.normal(k_x, (B, T, input_size), jnp.float32)
    params = make_lstmae_params(k_p, input_size, hidden_size, num_layers)

    out = jax.jit(lstmae_forward)(x, params)
    out = jax.block_until_ready(out)

    ref = lstmae_forward_ref(x, params)
    assert out.shape == (B, T, input_size)
    assert jnp.allclose(out, ref, atol=2e-5, rtol=2e-5), "mismatch vs JAX reference"
    print("KERNEL_OK")
</pallas_src>

<mosaic_0001>
module attributes {stable_mosaic.version = 11 : i64} {
  func.func @kernel(%arg0: i32, %arg1: i32, %arg2: memref<8x8x16xf32, #tpu.memory_space<vmem>>, %arg3: memref<16x128xf32, #tpu.memory_space<vmem>>, %arg4: memref<32x128xf32, #tpu.memory_space<vmem>>, %arg5: memref<1x128xf32, #tpu.memory_space<vmem>>, %arg6: memref<8x8x32xf32, #tpu.memory_space<vmem>>, %arg7: memref<64x128xf32, #tpu.memory_space<vmem>>, %arg8: memref<8x32xf32, #tpu.memory_space<vmem>>, %arg9: memref<8x32xf32, #tpu.memory_space<vmem>>) attributes {dimension_semantics = [#tpu.dimension_semantics<parallel>, #tpu.dimension_semantics<arbitrary>], iteration_bounds = array<i64: 1, 1>, scalar_prefetch = 0 : i64, scratch_operands = 3 : i64, tpu.core_type = #tpu.core_type<tc>, window_params = [{transform_indices = @transform_0, window_bounds = array<i64: 8, 8, 16>}, {pipeline_mode = #tpu.pipeline_mode<synchronous>, transform_indices = @transform_1, window_bounds = array<i64: 16, 128>}, {pipeline_mode = #tpu.pipeline_mode<synchronous>, transform_indices = @transform_2, window_bounds = array<i64: 32, 128>}, {pipeline_mode = #tpu.pipeline_mode<synchronous>, transform_indices = @transform_3, window_bounds = array<i64: 1, 128>}, {transform_indices = @transform_4, window_bounds = array<i64: 8, 8, 32>}]} {
    %c0_i32 = arith.constant 0 : i32
    %0 = arith.cmpi eq, %arg1, %c0_i32 : i32
    %1 = arith.extui %0 : i1 to i32
    %c0_i32_0 = arith.constant 0 : i32
    %2 = arith.cmpi ne, %1, %c0_i32_0 : i32
    scf.if %2 {
      %cst_161 = arith.constant 0.000000e+00 : f32
      %335 = vector.broadcast %cst_161 : f32 to vector<8x32xf32>
      %c0_162 = arith.constant 0 : index
      %c0_163 = arith.constant 0 : index
      %336 = vector.load %arg8[%c0_162, %c0_163] : memref<8x32xf32, #tpu.memory_space<vmem>>, vector<8x32xf32>
      tpu.vector_store %arg8[%c0_162, %c0_163], %335 {strides = array<i32>} : memref<8x32xf32, #tpu.memory_space<vmem>>, vector<8x32xf32>,
      %cst_164 = arith.constant 0.000000e+00 : f32
      %337 = vector.broadcast %cst_164 : f32 to vector<8x32xf32>
      %c0_165 = arith.constant 0 : index
      %c0_166 = arith.constant 0 : index
      %338 = vector.load %arg9[%c0_165, %c0_166] : memref<8x32xf32, #tpu.memory_space<vmem>>, vector<8x32xf32>
      tpu.vector_store %arg9[%c0_165, %c0_166], %337 {strides = array<i32>} : memref<8x32xf32, #tpu.memory_space<vmem>>, vector<8x32xf32>,
    } else {
    }
    %c0 = arith.constant 0 : index
    %c0_1 = arith.constant 0 : index
    %c0_2 = arith.constant 0 : index
    %3 = vector.load %arg2[%c0, %c0_1, %c0_2] : memref<8x8x16xf32, #tpu.memory_space<vmem>>, vector<8x8x16xf32>
    %4 = vector.shape_cast %3 : vector<8x8x16xf32> to vector<64x16xf32>
    %c0_3 = arith.constant 0 : index
    %c0_4 = arith.constant 0 : index
    %5 = vector.load %arg3[%c0_3, %c0_4] : memref<16x128xf32, #tpu.memory_space<vmem>>, vector<16x128xf32>
    %cst = arith.constant dense<0.000000e+00> : vector<64x128xf32>
    %6 = tpu.matmul %4, %5, %cst {dimension_numbers = #tpu.dot_dimension_numbers<[1], [0], [0], [1], [0, 0, 1, 1], [], []>} : vector<64x16xf32>, vector<16x128xf32>, vector<64x128xf32> -> vector<64x128xf32>
    %c0_5 = arith.constant 0 : index
    %c0_6 = arith.constant 0 : index
    %7 = vector.load %arg5[%c0_5, %c0_6] : memref<1x128xf32, #tpu.memory_space<vmem>>, vector<1x128xf32>
    %8 = vector.broadcast %7 : vector<1x128xf32> to vector<64x128xf32>
    %9 = arith.addf %6, %8 : vector<64x128xf32>
    %c0_7 = arith.constant 0 : index
    %c0_8 = arith.constant 0 : index
    %10 = vector.load %arg7[%c0_7, %c0_8] : memref<64x128xf32, #tpu.memory_space<vmem>>, vector<64x128xf32>
    tpu.vector_store %arg7[%c0_7, %c0_8], %9 {strides = array<i32>} : memref<64x128xf32, #tpu.memory_space<vmem>>, vector<64x128xf32>,
    %c0_i32_9 = arith.constant 0 : i32
    %c8_i32 = arith.constant 8 : i32
    %11 = arith.muli %c0_i32_9, %c8_i32 : i32
    %12 = tpu.assume_multiple %11, 8 : i32
    %13 = arith.index_cast %12 : i32 to index
    %c0_10 = arith.constant 0 : index
    %14 = vector.load %arg7[%13, %c0_10] : memref<64x128xf32, #tpu.memory_space<vmem>>, vector<8x128xf32>
    %c0_11 = arith.constant 0 : index
    %c0_12 = arith.constant 0 : index
    %15 = vector.load %arg8[%c0_11, %c0_12] : memref<8x32xf32, #tpu.memory_space<vmem>>, vector<8x32xf32>
    %c0_13 = arith.constant 0 : index
    %c0_14 = arith.constant 0 : index
    %16 = vector.load %arg4[%c0_13, %c0_14] : memref<32x128xf32, #tpu.memory_space<vmem>>, vector<32x128xf32>
    %cst_15 = arith.constant dense<0.000000e+00> : vector<8x128xf32>
    %17 = tpu.matmul %15, %16, %cst_15 {dimension_numbers = #tpu.dot_dimension_numbers<[1], [0], [0], [1], [0, 0, 1, 1], [], []>} : vector<8x32xf32>, vector<32x128xf32>, vector<8x128xf32> -> vector<8x128xf32>
    %18 = arith.addf %14, %17 : vector<8x128xf32>
    %19 = vector.extract_strided_slice %18 {offsets = [0, 0], sizes = [8, 32], strides = [1, 1]} : vector<8x128xf32> to vector<8x32xf32>
    %20 = arith.negf %19 : vector<8x32xf32>
    %21 = math.exp %20 : vector<8x32xf32>
    %cst_16 = arith.constant 1.000000e+00 : f32
    %22 = vector.broadcast %cst_16 : f32 to vector<8x32xf32>
    %23 = arith.addf %22, %21 : vector<8x32xf32>
    %24 = arith.divf %22, %23 : vector<8x32xf32>
    %25 = vector.extract_strided_slice %18 {offsets = [0, 32], sizes = [8, 32], strides = [1, 1]} : vector<8x128xf32> to vector<8x32xf32>
    %26 = arith.negf %25 : vector<8x32xf32>
    %27 = math.exp %26 : vector<8x32xf32>
    %cst_17 = arith.constant 1.000000e+00 : f32
    %28 = vector.broadcast %cst_17 : f32 to vector<8x32xf32>
    %29 = arith.addf %28, %27 : vector<8x32xf32>
    %30 = arith.divf %28, %29 : vector<8x32xf32>
    %31 = vector.extract_strided_slice %18 {offsets = [0, 64], sizes = [8, 32], strides = [1, 1]} : vector<8x128xf32> to vector<8x32xf32>
    %32 = math.tanh %31 : vector<8x32xf32>
    %33 = vector.extract_strided_slice %18 {offsets = [0, 96], sizes = [8, 32], strides = [1, 1]} : vector<8x128xf32> to vector<8x32xf32>
    %34 = arith.negf %33 : vector<8x32xf32>
    %35 = math.exp %34 : vector<8x32xf32>
    %cst_18 = arith.constant 1.000000e+00 : f32
    %36 = vector.broadcast %cst_18 : f32 to vector<8x32xf32>
    %37 = arith.addf %36, %35 : vector<8x32xf32>
    %38 = arith.divf %36, %37 : vector<8x32xf32>
    %c0_19 = arith.constant 0 : index
    %c0_20 = arith.constant 0 : index
    %39 = vector.load %arg9[%c0_19, %c0_20] : memref<8x32xf32, #tpu.memory_space<vmem>>, vector<8x32xf32>
    %40 = arith.mulf %30, %39 : vector<8x32xf32>
    %41 = arith.mulf %24, %32 : vector<8x32xf32>
    %42 = arith.addf %40, %41 : vector<8x32xf32>
    %43 = math.tanh %42 : vector<8x32xf32>
    %44 = arith.mulf %38, %43 : vector<8x32xf32>
    %c0_21 = arith.constant 0 : index
    %c0_22 = arith.constant 0 : index
    %45 = vector.load %arg9[%c0_21, %c0_22] : memref<8x32xf32, #tpu.memory_space<vmem>>, vector<8x32xf32>
    tpu.vector_store %arg9[%c0_21, %c0_22], %42 {strides = array<i32>} : memref<8x32xf32, #tpu.memory_space<vmem>>, vector<8x32xf32>,
    %c0_23 = arith.constant 0 : index
    %c0_24 = arith.constant 0 : index
    %46 = vector.load %arg8[%c0_23, %c0_24] : memref<8x32xf32, #tpu.memory_space<vmem>>, vector<8x32xf32>
    tpu.vector_store %arg8[%c0_23, %c0_24], %44 {strides = array<i32>} : memref<8x32xf32, #tpu.memory_space<vmem>>, vector<8x32xf32>,
    %47 = arith.index_cast %c0_i32_9 : i32 to index
    %c0_25 = arith.constant 0 : index
    %c0_26 = arith.constant 0 : index
    %48 = vector.load %arg6[%47, %c0_25, %c0_26] : memref<8x8x32xf32, #tpu.memory_space<vmem>>, vector<1x8x32xf32>
    %49 = vector.shape_cast %48 : vector<1x8x32xf32> to vector<8x32xf32>
    %50 = vector.shape_cast %44 : vector<8x32xf32> to vector<1x8x32xf32>
    tpu.vector_store %arg6[%47, %c0_25, %c0_26], %50 {strides = array<i32>} : memref<8x8x32xf32, #tpu.memory_space<vmem>>, vector<1x8x32xf32>,
    %c1_i32 = arith.constant 1 : i32
    %c8_i32_27 = arith.constant 8 : i32
    %51 = arith.muli %c1_i32, %c8_i32_27 : i32
    %52 = tpu.assume_multiple %51, 8 : i32
    %53 = arith.index_cast %52 : i32 to index
    %c0_28 = arith.constant 0 : index
    %54 = vector.load %arg7[%53, %c0_28] : memref<64x128xf32, #tpu.memory_space<vmem>>, vector<8x128xf32>
    %c0_29 = arith.constant 0 : index
    %c0_30 = arith.constant 0 : index
    %55 = vector.load %arg8[%c0_29, %c0_30] : memref<8x32xf32, #tpu.memory_space<vmem>>, vector<8x32xf32>
    %c0_31 = arith.constant 0 : index
    %c0_32 = arith.constant 0 : index
    %56 = vector.load %arg4[%c0_31, %c0_32] : memref<32x128xf32, #tpu.memory_space<vmem>>, vector<32x128xf32>
    %cst_33 = arith.constant dense<0.000000e+00> : vector<8x128xf32>
    %57 = tpu.matmul %55, %56, %cst_33 {dimension_numbers = #tpu.dot_dimension_numbers<[1], [0], [0], [1], [0, 0, 1, 1], [], []>} : vector<8x32xf32>, vector<32x128xf32>, vector<8x128xf32> -> vector<8x128xf32>
    %58 = arith.addf %54, %57 : vector<8x128xf32>
    %59 = vector.extract_strided_slice %58 {offsets = [0, 0], sizes = [8, 32], strides = [1, 1]} : vector<8x128xf32> to vector<8x32xf32>
    %60 = arith.negf %59 : vector<8x32xf32>
    %61 = math.exp %60 : vector<8x32xf32>
    %cst_34 = arith.constant 1.000000e+00 : f32
    %62 = vector.broadcast %cst_34 : f32 to vector<8x32xf32>
    %63 = arith.addf %62, %61 : vector<8x32xf32>
    %64 = arith.divf %62, %63 : vector<8x32xf32>
    %65 = vector.extract_strided_slice %58 {offsets = [0, 32], sizes = [8, 32], strides = [1, 1]} : vector<8x128xf32> to vector<8x32xf32>
    %66 = arith.negf %65 : vector<8x32xf32>
    %67 = math.exp %66 : vector<8x32xf32>
    %cst_35 = arith.constant 1.000000e+00 : f32
    %68 = vector.broadcast %cst_35 : f32 to vector<8x32xf32>
    %69 = arith.addf %68, %67 : vector<8x32xf32>
    %70 = arith.divf %68, %69 : vector<8x32xf32>
    %71 = vector.extract_strided_slice %58 {offsets = [0, 64], sizes = [8, 32], strides = [1, 1]} : vector<8x128xf32> to vector<8x32xf32>
    %72 = math.tanh %71 : vector<8x32xf32>
    %73 = vector.extract_strided_slice %58 {offsets = [0, 96], sizes = [8, 32], strides = [1, 1]} : vector<8x128xf32> to vector<8x32xf32>
    %74 = arith.negf %73 : vector<8x32xf32>
    %75 = math.exp %74 : vector<8x32xf32>
    %cst_36 = arith.constant 1.000000e+00 : f32
    %76 = vector.broadcast %cst_36 : f32 to vector<8x32xf32>
    %77 = arith.addf %76, %75 : vector<8x32xf32>
    %78 = arith.divf %76, %77 : vector<8x32xf32>
    %c0_37 = arith.constant 0 : index
    %c0_38 = arith.constant 0 : index
    %79 = vector.load %arg9[%c0_37, %c0_38] : memref<8x32xf32, #tpu.memory_space<vmem>>, vector<8x32xf32>
    %80 = arith.mulf %70, %79 : vector<8x32xf32>
    %81 = arith.mulf %64, %72 : vector<8x32xf32>
    %82 = arith.addf %80, %81 : vector<8x32xf32>
    %83 = math.tanh %82 : vector<8x32xf32>
    %84 = arith.mulf %78, %83 : vector<8x32xf32>
    %c0_39 = arith.constant 0 : index
    %c0_40 = arith.constant 0 : index
    %85 = vector.load %arg9[%c0_39, %c0_40] : memref<8x32xf32, #tpu.memory_space<vmem>>, vector<8x32xf32>
    tpu.vector_store %arg9[%c0_39, %c0_40], %82 {strides = array<i32>} : memref<8x32xf32, #tpu.memory_space<vmem>>, vector<8x32xf32>,
    %c0_41 = arith.constant 0 : index
    %c0_42 = arith.constant 0 : index
    %86 = vector.load %arg8[%c0_41, %c0_42] : memref<8x32xf32, #tpu.memory_space<vmem>>, vector<8x32xf32>
    tpu.vector_store %arg8[%c0_41, %c0_42], %84 {strides = array<i32>} : memref<8x32xf32, #tpu.memory_space<vmem>>, vector<8x32xf32>,
    %87 = arith.index_cast %c1_i32 : i32 to index
    %c0_43 = arith.constant 0 : index
    %c0_44 = arith.constant 0 : index
    %88 = vector.load %arg6[%87, %c0_43, %c0_44] : memref<8x8x32xf32, #tpu.memory_space<vmem>>, vector<1x8x32xf32>
    %89 = vector.shape_cast %88 : vector<1x8x32xf32> to vector<8x32xf32>
    %90 = vector.shape_cast %84 : vector<8x32xf32> to vector<1x8x32xf32>
    tpu.vector_store %arg6[%87, %c0_43, %c0_44], %90 {strides = array<i32>} : memref<8x8x32xf32, #tpu.memory_space<vmem>>, vector<1x8x32xf32>,
    %c2_i32 = arith.constant 2 : i32
    %c8_i32_45 = arith.constant 8 : i32
    %91 = arith.muli %c2_i32, %c8_i32_45 : i32
    %92 = tpu.assume_multiple %91, 8 : i32
    %93 = arith.index_cast %92 : i32 to index
    %c0_46 = arith.constant 0 : index
    %94 = vector.load %arg7[%93, %c0_46] : memref<64x128xf32, #tpu.memory_space<vmem>>, vector<8x128xf32>
    %c0_47 = arith.constant 0 : index
    %c0_48 = arith.constant 0 : index
    %95 = vector.load %arg8[%c0_47, %c0_48] : memref<8x32xf32, #tpu.memory_space<vmem>>, vector<8x32xf32>
    %c0_49 = arith.constant 0 : index
    %c0_50 = arith.constant 0 : index
    %96 = vector.load %arg4[%c0_49, %c0_50] : memref<32x128xf32, #tpu.memory_space<vmem>>, vector<32x128xf32>
    %cst_51 = arith.constant dense<0.000000e+00> : vector<8x128xf32>
    %97 = tpu.matmul %95, %96, %cst_51 {dimension_numbers = #tpu.dot_dimension_numbers<[1], [0], [0], [1], [0, 0, 1, 1], [], []>} : vector<8x32xf32>, vector<32x128xf32>, vector<8x128xf32> -> vector<8x128xf32>
    %98 = arith.addf %94, %97 : vector<8x128xf32>
    %99 = vector.extract_strided_slice %98 {offsets = [0, 0], sizes = [8, 32], strides = [1, 1]} : vector<8x128xf32> to vector<8x32xf32>
    %100 = arith.negf %99 : vector<8x32xf32>
    %101 = math.exp %100 : vector<8x32xf32>
    %cst_52 = arith.constant 1.000000e+00 : f32
    %102 = vector.broadcast %cst_52 : f32 to vector<8x32xf32>
    %103 = arith.addf %102, %101 : vector<8x32xf32>
    %104 = arith.divf %102, %103 : vector<8x32xf32>
    %105 = vector.extract_strided_slice %98 {offsets = [0, 32], sizes = [8, 32], strides = [1, 1]} : vector<8x128xf32> to vector<8x32xf32>
    %106 = arith.negf %105 : vector<8x32xf32>
    %107 = math.exp %106 : vector<8x32xf32>
    %cst_53 = arith.constant 1.000000e+00 : f32
    %108 = vector.broadcast %cst_53 : f32 to vector<8x32xf32>
    %109 = arith.addf %108, %107 : vector<8x32xf32>
    %110 = arith.divf %108, %109 : vector<8x32xf32>
    %111 = vector.extract_strided_slice %98 {offsets = [0, 64], sizes = [8, 32], strides = [1, 1]} : vector<8x128xf32> to vector<8x32xf32>
    %112 = math.tanh %111 : vector<8x32xf32>
    %113 = vector.extract_strided_slice %98 {offsets = [0, 96], sizes = [8, 32], strides = [1, 1]} : vector<8x128xf32> to vector<8x32xf32>
    %114 = arith.negf %113 : vector<8x32xf32>
    %115 = math.exp %114 : vector<8x32xf32>
    %cst_54 = arith.constant 1.000000e+00 : f32
    %116 = vector.broadcast %cst_54 : f32 to vector<8x32xf32>
    %117 = arith.addf %116, %115 : vector<8x32xf32>
    %118 = arith.divf %116, %117 : vector<8x32xf32>
    %c0_55 = arith.constant 0 : index
    %c0_56 = arith.constant 0 : index
    %119 = vector.load %arg9[%c0_55, %c0_56] : memref<8x32xf32, #tpu.memory_space<vmem>>, vector<8x32xf32>
    %120 = arith.mulf %110, %119 : vector<8x32xf32>
    %121 = arith.mulf %104, %112 : vector<8x32xf32>
    %122 = arith.addf %120, %121 : vector<8x32xf32>
    %123 = math.tanh %122 : vector<8x32xf32>
    %124 = arith.mulf %118, %123 : vector<8x32xf32>
    %c0_57 = arith.constant 0 : index
    %c0_58 = arith.constant 0 : index
    %125 = vector.load %arg9[%c0_57, %c0_58] : memref<8x32xf32, #tpu.memory_space<vmem>>, vector<8x32xf32>
    tpu.vector_store %arg9[%c0_57, %c0_58], %122 {strides = array<i32>} : memref<8x32xf32, #tpu.memory_space<vmem>>, vector<8x32xf32>,
    %c0_59 = arith.constant 0 : index
    %c0_60 = arith.constant 0 : index
    %126 = vector.load %arg8[%c0_59, %c0_60] : memref<8x32xf32, #tpu.memory_space<vmem>>, vector<8x32xf32>
    tpu.vector_store %arg8[%c0_59, %c0_60], %124 {strides = array<i32>} : memref<8x32xf32, #tpu.memory_space<vmem>>, vector<8x32xf32>,
    %127 = arith.index_cast %c2_i32 : i32 to index
    %c0_61 = arith.constant 0 : index
    %c0_62 = arith.constant 0 : index
    %128 = vector.load %arg6[%127, %c0_61, %c0_62] : memref<8x8x32xf32, #tpu.memory_space<vmem>>, vector<1x8x32xf32>
    %129 = vector.shape_cast %128 : vector<1x8x32xf32> to vector<8x32xf32>
    %130 = vector.shape_cast %124 : vector<8x32xf32> to vector<1x8x32xf32>
    tpu.vector_store %arg6[%127, %c0_61, %c0_62], %130 {strides = array<i32>} : memref<8x8x32xf32, #tpu.memory_space<vmem>>, vector<1x8x32xf32>,
    %c3_i32 = arith.constant 3 : i32
    %c8_i32_63 = arith.constant 8 : i32
    %131 = arith.muli %c3_i32, %c8_i32_63 : i32
    %132 = tpu.assume_multiple %131, 8 : i32
    %133 = arith.index_cast %132 : i32 to index
    %c0_64 = arith.constant 0 : index
    %134 = vector.load %arg7[%133, %c0_64] : memref<64x128xf32, #tpu.memory_space<vmem>>, vector<8x128xf32>
    %c0_65 = arith.constant 0 : index
    %c0_66 = arith.constant 0 : index
    %135 = vector.load %arg8[%c0_65, %c0_66] : memref<8x32xf32, #tpu.memory_space<vmem>>, vector<8x32xf32>
    %c0_67 = arith.constant 0 : index
    %c0_68 = arith.constant 0 : index
    %136 = vector.load %arg4[%c0_67, %c0_68] : memref<32x128xf32, #tpu.memory_space<vmem>>, vector<32x128xf32>
    %cst_69 = arith.constant dense<0.000000e+00> : vector<8x128xf32>
    %137 = tpu.matmul %135, %136, %cst_69 {dimension_numbers = #tpu.dot_dimension_numbers<[1], [0], [0], [1], [0, 0, 1, 1], [], []>} : vector<8x32xf32>, vector<32x128xf32>, vector<8x128xf32> -> vector<8x128xf32>
    %138 = arith.addf %134, %137 : vector<8x128xf32>
    %139 = vector.extract_strided_slice %138 {offsets = [0, 0], sizes = [8, 32], strides = [1, 1]} : vector<8x128xf32> to vector<8x32xf32>
    %140 = arith.negf %139 : vector<8x32xf32>
    %141 = math.exp %140 : vector<8x32xf32>
    %cst_70 = arith.constant 1.000000e+00 : f32
    %142 = vector.broadcast %cst_70 : f32 to vector<8x32xf32>
    %143 = arith.addf %142, %141 : vector<8x32xf32>
    %144 = arith.divf %142, %143 : vector<8x32xf32>
    %145 = vector.extract_strided_slice %138 {offsets = [0, 32], sizes = [8, 32], strides = [1, 1]} : vector<8x128xf32> to vector<8x32xf32>
    %146 = arith.negf %145 : vector<8x32xf32>
    %147 = math.exp %146 : vector<8x32xf32>
    %cst_71 = arith.constant 1.000000e+00 : f32
    %148 = vector.broadcast %cst_71 : f32 to vector<8x32xf32>
    %149 = arith.addf %148, %147 : vector<8x32xf32>
    %150 = arith.divf %148, %149 : vector<8x32xf32>
    %151 = vector.extract_strided_slice %138 {offsets = [0, 64], sizes = [8, 32], strides = [1, 1]} : vector<8x128xf32> to vector<8x32xf32>
    %152 = math.tanh %151 : vector<8x32xf32>
    %153 = vector.extract_strided_slice %138 {offsets = [0, 96], sizes = [8, 32], strides = [1, 1]} : vector<8x128xf32> to vector<8x32xf32>
    %154 = arith.negf %153 : vector<8x32xf32>
    %155 = math.exp %154 : vector<8x32xf32>
    %cst_72 = arith.constant 1.000000e+00 : f32
    %156 = vector.broadcast %cst_72 : f32 to vector<8x32xf32>
    %157 = arith.addf %156, %155 : vector<8x32xf32>
    %158 = arith.divf %156, %157 : vector<8x32xf32>
    %c0_73 = arith.constant 0 : index
    %c0_74 = arith.constant 0 : index
    %159 = vector.load %arg9[%c0_73, %c0_74] : memref<8x32xf32, #tpu.memory_space<vmem>>, vector<8x32xf32>
    %160 = arith.mulf %150, %159 : vector<8x32xf32>
    %161 = arith.mulf %144, %152 : vector<8x32xf32>
    %162 = arith.addf %160, %161 : vector<8x32xf32>
    %163 = math.tanh %162 : vector<8x32xf32>
    %164 = arith.mulf %158, %163 : vector<8x32xf32>
    %c0_75 = arith.constant 0 : index
    %c0_76 = arith.constant 0 : index
    %165 = vector.load %arg9[%c0_75, %c0_76] : memref<8x32xf32, #tpu.memory_space<vmem>>, vector<8x32xf32>
    tpu.vector_store %arg9[%c0_75, %c0_76], %162 {strides = array<i32>} : memref<8x32xf32, #tpu.memory_space<vmem>>, vector<8x32xf32>,
    %c0_77 = arith.constant 0 : index
    %c0_78 = arith.constant 0 : index
    %166 = vector.load %arg8[%c0_77, %c0_78] : memref<8x32xf32, #tpu.memory_space<vmem>>, vector<8x32xf32>
    tpu.vector_store %arg8[%c0_77, %c0_78], %164 {strides = array<i32>} : memref<8x32xf32, #tpu.memory_space<vmem>>, vector<8x32xf32>,
    %167 = arith.index_cast %c3_i32 : i32 to index
    %c0_79 = arith.constant 0 : index
    %c0_80 = arith.constant 0 : index
    %168 = vector.load %arg6[%167, %c0_79, %c0_80] : memref<8x8x32xf32, #tpu.memory_space<vmem>>, vector<1x8x32xf32>
    %169 = vector.shape_cast %168 : vector<1x8x32xf32> to vector<8x32xf32>
    %170 = vector.shape_cast %164 : vector<8x32xf32> to vector<1x8x32xf32>
    tpu.vector_store %arg6[%167, %c0_79, %c0_80], %170 {strides = array<i32>} : memref<8x8x32xf32, #tpu.memory_space<vmem>>, vector<1x8x32xf32>,
    %c4_i32 = arith.constant 4 : i32
    %c8_i32_81 = arith.constant 8 : i32
    %171 = arith.muli %c4_i32, %c8_i32_81 : i32
    %172 = tpu.assume_multiple %171, 8 : i32
    %173 = arith.index_cast %172 : i32 to index
    %c0_82 = arith.constant 0 : index
    %174 = vector.load %arg7[%173, %c0_82] : memref<64x128xf32, #tpu.memory_space<vmem>>, vector<8x128xf32>
    %c0_83 = arith.constant 0 : index
    %c0_84 = arith.constant 0 : index
    %175 = vector.load %arg8[%c0_83, %c0_84] : memref<8x32xf32, #tpu.memory_space<vmem>>, vector<8x32xf32>
    %c0_85 = arith.constant 0 : index
    %c0_86 = arith.constant 0 : index
    %176 = vector.load %arg4[%c0_85, %c0_86] : memref<32x128xf32, #tpu.memory_space<vmem>>, vector<32x128xf32>
    %cst_87 = arith.constant dense<0.000000e+00> : vector<8x128xf32>
    %177 = tpu.matmul %175, %176, %cst_87 {dimension_numbers = #tpu.dot_dimension_numbers<[1], [0], [0], [1], [0, 0, 1, 1], [], []>} : vector<8x32xf32>, vector<32x128xf32>, vector<8x128xf32> -> vector<8x128xf32>
    %178 = arith.addf %174, %177 : vector<8x128xf32>
    %179 = vector.extract_strided_slice %178 {offsets = [0, 0], sizes = [8, 32], strides = [1, 1]} : vector<8x128xf32> to vector<8x32xf32>
    %180 = arith.negf %179 : vector<8x32xf32>
    %181 = math.exp %180 : vector<8x32xf32>
    %cst_88 = arith.constant 1.000000e+00 : f32
    %182 = vector.broadcast %cst_88 : f32 to vector<8x32xf32>
    %183 = arith.addf %182, %181 : vector<8x32xf32>
    %184 = arith.divf %182, %183 : vector<8x32xf32>
    %185 = vector.extract_strided_slice %178 {offsets = [0, 32], sizes = [8, 32], strides = [1, 1]} : vector<8x128xf32> to vector<8x32xf32>
    %186 = arith.negf %185 : vector<8x32xf32>
    %187 = math.exp %186 : vector<8x32xf32>
    %cst_89 = arith.constant 1.000000e+00 : f32
    %188 = vector.broadcast %cst_89 : f32 to vector<8x32xf32>
    %189 = arith.addf %188, %187 : vector<8x32xf32>
    %190 = arith.divf %188, %189 : vector<8x32xf32>
    %191 = vector.extract_strided_slice %178 {offsets = [0, 64], sizes = [8, 32], strides = [1, 1]} : vector<8x128xf32> to vector<8x32xf32>
    %192 = math.tanh %191 : vector<8x32xf32>
    %193 = vector.extract_strided_slice %178 {offsets = [0, 96], sizes = [8, 32], strides = [1, 1]} : vector<8x128xf32> to vector<8x32xf32>
    %194 = arith.negf %193 : vector<8x32xf32>
    %195 = math.exp %194 : vector<8x32xf32>
    %cst_90 = arith.constant 1.000000e+00 : f32
    %196 = vector.broadcast %cst_90 : f32 to vector<8x32xf32>
    %197 = arith.addf %196, %195 : vector<8x32xf32>
    %198 = arith.divf %196, %197 : vector<8x32xf32>
    %c0_91 = arith.constant 0 : index
    %c0_92 = arith.constant 0 : index
    %199 = vector.load %arg9[%c0_91, %c0_92] : memref<8x32xf32, #tpu.memory_space<vmem>>, vector<8x32xf32>
    %200 = arith.mulf %190, %199 : vector<8x32xf32>
    %201 = arith.mulf %184, %192 : vector<8x32xf32>
    %202 = arith.addf %200, %201 : vector<8x32xf32>
    %203 = math.tanh %202 : vector<8x32xf32>
    %204 = arith.mulf %198, %203 : vector<8x32xf32>
    %c0_93 = arith.constant 0 : index
    %c0_94 = arith.constant 0 : index
    %205 = vector.load %arg9[%c0_93, %c0_94] : memref<8x32xf32, #tpu.memory_space<vmem>>, vector<8x32xf32>
    tpu.vector_store %arg9[%c0_93, %c0_94], %202 {strides = array<i32>} : memref<8x32xf32, #tpu.memory_space<vmem>>, vector<8x32xf32>,
    %c0_95 = arith.constant 0 : index
    %c0_96 = arith.constant 0 : index
    %206 = vector.load %arg8[%c0_95, %c0_96] : memref<8x32xf32, #tpu.memory_space<vmem>>, vector<8x32xf32>
    tpu.vector_store %arg8[%c0_95, %c0_96], %204 {strides = array<i32>} : memref<8x32xf32, #tpu.memory_space<vmem>>, vector<8x32xf32>,
    %207 = arith.index_cast %c4_i32 : i32 to index
    %c0_97 = arith.constant 0 : index
    %c0_98 = arith.constant 0 : index
    %208 = vector.load %arg6[%207, %c0_97, %c0_98] : memref<8x8x32xf32, #tpu.memory_space<vmem>>, vector<1x8x32xf32>
    %209 = vector.shape_cast %208 : vector<1x8x32xf32> to vector<8x32xf32>
    %210 = vector.shape_cast %204 : vector<8x32xf32> to vector<1x8x32xf32>
    tpu.vector_store %arg6[%207, %c0_97, %c0_98], %210 {strides = array<i32>} : memref<8x8x32xf32, #tpu.memory_space<vmem>>, vector<1x8x32xf32>,
    %c5_i32 = arith.constant 5 : i32
    %c8_i32_99 = arith.constant 8 : i32
    %211 = arith.muli %c5_i32, %c8_i32_99 : i32
    %212 = tpu.assume_multiple %211, 8 : i32
    %213 = arith.index_cast %212 : i32 to index
    %c0_100 = arith.constant 0 : index
    %214 = vector.load %arg7[%213, %c0_100] : memref<64x128xf32, #tpu.memory_space<vmem>>, vector<8x128xf32>
    %c0_101 = arith.constant 0 : index
    %c0_102 = arith.constant 0 : index
    %215 = vector.load %arg8[%c0_101, %c0_102] : memref<8x32xf32, #tpu.memory_space<vmem>>, vector<8x32xf32>
    %c0_103 = arith.constant 0 : index
    %c0_104 = arith.constant 0 : index
    %216 = vector.load %arg4[%c0_103, %c0_104] : memref<32x128xf32, #tpu.memory_space<vmem>>, vector<32x128xf32>
    %cst_105 = arith.constant dense<0.000000e+00> : vector<8x128xf32>
    %217 = tpu.matmul %215, %216, %cst_105 {dimension_numbers = #tpu.dot_dimension_numbers<[1], [0], [0], [1], [0, 0, 1, 1], [], []>} : vector<8x32xf32>, vector<32x128xf32>, vector<8x128xf32> -> vector<8x128xf32>
    %218 = arith.addf %214, %217 : vector<8x128xf32>
    %219 = vector.extract_strided_slice %218 {offsets = [0, 0], sizes = [8, 32], strides = [1, 1]} : vector<8x128xf32> to vector<8x32xf32>
    %220 = arith.negf %219 : vector<8x32xf32>
    %221 = math.exp %220 : vector<8x32xf32>
    %cst_106 = arith.constant 1.000000e+00 : f32
    %222 = vector.broadcast %cst_106 : f32 to vector<8x32xf32>
    %223 = arith.addf %222, %221 : vector<8x32xf32>
    %224 = arith.divf %222, %223 : vector<8x32xf32>
    %225 = vector.extract_strided_slice %218 {offsets = [0, 32], sizes = [8, 32], strides = [1, 1]} : vector<8x128xf32> to vector<8x32xf32>
    %226 = arith.negf %225 : vector<8x32xf32>
    %227 = math.exp %226 : vector<8x32xf32>
    %cst_107 = arith.constant 1.000000e+00 : f32
    %228 = vector.broadcast %cst_107 : f32 to vector<8x32xf32>
    %229 = arith.addf %228, %227 : vector<8x32xf32>
    %230 = arith.divf %228, %229 : vector<8x32xf32>
    %231 = vector.extract_strided_slice %218 {offsets = [0, 64], sizes = [8, 32], strides = [1, 1]} : vector<8x128xf32> to vector<8x32xf32>
    %232 = math.tanh %231 : vector<8x32xf32>
    %233 = vector.extract_strided_slice %218 {offsets = [0, 96], sizes = [8, 32], strides = [1, 1]} : vector<8x128xf32> to vector<8x32xf32>
    %234 = arith.negf %233 : vector<8x32xf32>
    %235 = math.exp %234 : vector<8x32xf32>
    %cst_108 = arith.constant 1.000000e+00 : f32
    %236 = vector.broadcast %cst_108 : f32 to vector<8x32xf32>
    %237 = arith.addf %236, %235 : vector<8x32xf32>
    %238 = arith.divf %236, %237 : vector<8x32xf32>
    %c0_109 = arith.constant 0 : index
    %c0_110 = arith.constant 0 : index
    %239 = vector.load %arg9[%c0_109, %c0_110] : memref<8x32xf32, #tpu.memory_space<vmem>>, vector<8x32xf32>
    %240 = arith.mulf %230, %239 : vector<8x32xf32>
    %241 = arith.mulf %224, %232 : vector<8x32xf32>
    %242 = arith.addf %240, %241 : vector<8x32xf32>
    %243 = math.tanh %242 : vector<8x32xf32>
    %244 = arith.mulf %238, %243 : vector<8x32xf32>
    %c0_111 = arith.constant 0 : index
    %c0_112 = arith.constant 0 : index
    %245 = vector.load %arg9[%c0_111, %c0_112] : memref<8x32xf32, #tpu.memory_space<vmem>>, vector<8x32xf32>
    tpu.vector_store %arg9[%c0_111, %c0_112], %242 {strides = array<i32>} : memref<8x32xf32, #tpu.memory_space<vmem>>, vector<8x32xf32>,
    %c0_113 = arith.constant 0 : index
    %c0_114 = arith.constant 0 : index
    %246 = vector.load %arg8[%c0_113, %c0_114] : memref<8x32xf32, #tpu.memory_space<vmem>>, vector<8x32xf32>
    tpu.vector_store %arg8[%c0_113, %c0_114], %244 {strides = array<i32>} : memref<8x32xf32, #tpu.memory_space<vmem>>, vector<8x32xf32>,
    %247 = arith.index_cast %c5_i32 : i32 to index
    %c0_115 = arith.constant 0 : index
    %c0_116 = arith.constant 0 : index
    %248 = vector.load %arg6[%247, %c0_115, %c0_116] : memref<8x8x32xf32, #tpu.memory_space<vmem>>, vector<1x8x32xf32>
    %249 = vector.shape_cast %248 : vector<1x8x32xf32> to vector<8x32xf32>
    %250 = vector.shape_cast %244 : vector<8x32xf32> to vector<1x8x32xf32>
    tpu.vector_store %arg6[%247, %c0_115, %c0_116], %250 {strides = array<i32>} : memref<8x8x32xf32, #tpu.memory_space<vmem>>, vector<1x8x32xf32>,
    %c6_i32 = arith.constant 6 : i32
    %c8_i32_117 = arith.constant 8 : i32
    %251 = arith.muli %c6_i32, %c8_i32_117 : i32
    %252 = tpu.assume_multiple %251, 8 : i32
    %253 = arith.index_cast %252 : i32 to index
    %c0_118 = arith.constant 0 : index
    %254 = vector.load %arg7[%253, %c0_118] : memref<64x128xf32, #tpu.memory_space<vmem>>, vector<8x128xf32>
    %c0_119 = arith.constant 0 : index
    %c0_120 = arith.constant 0 : index
    %255 = vector.load %arg8[%c0_119, %c0_120] : memref<8x32xf32, #tpu.memory_space<vmem>>, vector<8x32xf32>
    %c0_121 = arith.constant 0 : index
    %c0_122 = arith.constant 0 : index
    %256 = vector.load %arg4[%c0_121, %c0_122] : memref<32x128xf32, #tpu.memory_space<vmem>>, vector<32x128xf32>
    %cst_123 = arith.constant dense<0.000000e+00> : vector<8x128xf32>
    %257 = tpu.matmul %255, %256, %cst_123 {dimension_numbers = #tpu.dot_dimension_numbers<[1], [0], [0], [1], [0, 0, 1, 1], [], []>} : vector<8x32xf32>, vector<32x128xf32>, vector<8x128xf32> -> vector<8x128xf32>
    %258 = arith.addf %254, %257 : vector<8x128xf32>
    %259 = vector.extract_strided_slice %258 {offsets = [0, 0], sizes = [8, 32], strides = [1, 1]} : vector<8x128xf32> to vector<8x32xf32>
    %260 = arith.negf %259 : vector<8x32xf32>
    %261 = math.exp %260 : vector<8x32xf32>
    %cst_124 = arith.constant 1.000000e+00 : f32
    %262 = vector.broadcast %cst_124 : f32 to vector<8x32xf32>
    %263 = arith.addf %262, %261 : vector<8x32xf32>
    %264 = arith.divf %262, %263 : vector<8x32xf32>
    %265 = vector.extract_strided_slice %258 {offsets = [0, 32], sizes = [8, 32], strides = [1, 1]} : vector<8x128xf32> to vector<8x32xf32>
    %266 = arith.negf %265 : vector<8x32xf32>
    %267 = math.exp %266 : vector<8x32xf32>
    %cst_125 = arith.constant 1.000000e+00 : f32
    %268 = vector.broadcast %cst_125 : f32 to vector<8x32xf32>
    %269 = arith.addf %268, %267 : vector<8x32xf32>
    %270 = arith.divf %268, %269 : vector<8x32xf32>
    %271 = vector.extract_strided_slice %258 {offsets = [0, 64], sizes = [8, 32], strides = [1, 1]} : vector<8x128xf32> to vector<8x32xf32>
    %272 = math.tanh %271 : vector<8x32xf32>
    %273 = vector.extract_strided_slice %258 {offsets = [0, 96], sizes = [8, 32], strides = [1, 1]} : vector<8x128xf32> to vector<8x32xf32>
    %274 = arith.negf %273 : vector<8x32xf32>
    %275 = math.exp %274 : vector<8x32xf32>
    %cst_126 = arith.constant 1.000000e+00 : f32
    %276 = vector.broadcast %cst_126 : f32 to vector<8x32xf32>
    %277 = arith.addf %276, %275 : vector<8x32xf32>
    %278 = arith.divf %276, %277 : vector<8x32xf32>
    %c0_127 = arith.constant 0 : index
    %c0_128 = arith.constant 0 : index
    %279 = vector.load %arg9[%c0_127, %c0_128] : memref<8x32xf32, #tpu.memory_space<vmem>>, vector<8x32xf32>
    %280 = arith.mulf %270, %279 : vector<8x32xf32>
    %281 = arith.mulf %264, %272 : vector<8x32xf32>
    %282 = arith.addf %280, %281 : vector<8x32xf32>
    %283 = math.tanh %282 : vector<8x32xf32>
    %284 = arith.mulf %278, %283 : vector<8x32xf32>
    %c0_129 = arith.constant 0 : index
    %c0_130 = arith.constant 0 : index
    %285 = vector.load %arg9[%c0_129, %c0_130] : memref<8x32xf32, #tpu.memory_space<vmem>>, vector<8x32xf32>
    tpu.vector_store %arg9[%c0_129, %c0_130], %282 {strides = array<i32>} : memref<8x32xf32, #tpu.memory_space<vmem>>, vector<8x32xf32>,
    %c0_131 = arith.constant 0 : index
    %c0_132 = arith.constant 0 : index
    %286 = vector.load %arg8[%c0_131, %c0_132] : memref<8x32xf32, #tpu.memory_space<vmem>>, vector<8x32xf32>
    tpu.vector_store %arg8[%c0_131, %c0_132], %284 {strides = array<i32>} : memref<8x32xf32, #tpu.memory_space<vmem>>, vector<8x32xf32>,
    %287 = arith.index_cast %c6_i32 : i32 to index
    %c0_133 = arith.constant 0 : index
    %c0_134 = arith.constant 0 : index
    %288 = vector.load %arg6[%287, %c0_133, %c0_134] : memref<8x8x32xf32, #tpu.memory_space<vmem>>, vector<1x8x32xf32>
    %289 = vector.shape_cast %288 : vector<1x8x32xf32> to vector<8x32xf32>
    %290 = vector.shape_cast %284 : vector<8x32xf32> to vector<1x8x32xf32>
    tpu.vector_store %arg6[%287, %c0_133, %c0_134], %290 {strides = array<i32>} : memref<8x8x32xf32, #tpu.memory_space<vmem>>, vector<1x8x32xf32>,
    %c7_i32 = arith.constant 7 : i32
    %c8_i32_135 = arith.constant 8 : i32
    %291 = arith.muli %c7_i32, %c8_i32_135 : i32
    %292 = tpu.assume_multiple %291, 8 : i32
    %293 = arith.index_cast %292 : i32 to index
    %c0_136 = arith.constant 0 : index
    %294 = vector.load %arg7[%293, %c0_136] : memref<64x128xf32, #tpu.memory_space<vmem>>, vector<8x128xf32>
    %c0_137 = arith.constant 0 : index
    %c0_138 = arith.constant 0 : index
    %295 = vector.load %arg8[%c0_137, %c0_138] : memref<8x32xf32, #tpu.memory_space<vmem>>, vector<8x32xf32>
    %c0_139 = arith.constant 0 : index
    %c0_140 = arith.constant 0 : index
    %296 = vector.load %arg4[%c0_139, %c0_140] : memref<32x128xf32, #tpu.memory_space<vmem>>, vector<32x128xf32>
    %cst_141 = arith.constant dense<0.000000e+00> : vector<8x128xf32>
    %297 = tpu.matmul %295, %296, %cst_141 {dimension_numbers = #tpu.dot_dimension_numbers<[1], [0], [0], [1], [0, 0, 1, 1], [], []>} : vector<8x32xf32>, vector<32x128xf32>, vector<8x128xf32> -> vector<8x128xf32>
    %298 = arith.addf %294, %297 : vector<8x128xf32>
    %299 = vector.extract_strided_slice %298 {offsets = [0, 0], sizes = [8, 32], strides = [1, 1]} : vector<8x128xf32> to vector<8x32xf32>
    %300 = arith.negf %299 : vector<8x32xf32>
    %301 = math.exp %300 : vector<8x32xf32>
    %cst_142 = arith.constant 1.000000e+00 : f32
    %302 = vector.broadcast %cst_142 : f32 to vector<8x32xf32>
    %303 = arith.addf %302, %301 : vector<8x32xf32>
    %304 = arith.divf %302, %303 : vector<8x32xf32>
    %305 = vector.extract_strided_slice %298 {offsets = [0, 32], sizes = [8, 32], strides = [1, 1]} : vector<8x128xf32> to vector<8x32xf32>
    %306 = arith.negf %305 : vector<8x32xf32>
    %307 = math.exp %306 : vector<8x32xf32>
    %cst_143 = arith.constant 1.000000e+00 : f32
    %308 = vector.broadcast %cst_143 : f32 to vector<8x32xf32>
    %309 = arith.addf %308, %307 : vector<8x32xf32>
    %310 = arith.divf %308, %309 : vector<8x32xf32>
    %311 = vector.extract_strided_slice %298 {offsets = [0, 64], sizes = [8, 32], strides = [1, 1]} : vector<8x128xf32> to vector<8x32xf32>
    %312 = math.tanh %311 : vector<8x32xf32>
    %313 = vector.extract_strided_slice %298 {offsets = [0, 96], sizes = [8, 32], strides = [1, 1]} : vector<8x128xf32> to vector<8x32xf32>
    %314 = arith.negf %313 : vector<8x32xf32>
    %315 = math.exp %314 : vector<8x32xf32>
    %cst_144 = arith.constant 1.000000e+00 : f32
    %316 = vector.broadcast %cst_144 : f32 to vector<8x32xf32>
    %317 = arith.addf %316, %315 : vector<8x32xf32>
    %318 = arith.divf %316, %317 : vector<8x32xf32>
    %c0_145 = arith.constant 0 : index
    %c0_146 = arith.constant 0 : index
    %319 = vector.load %arg9[%c0_145, %c0_146] : memref<8x32xf32, #tpu.memory_space<vmem>>, vector<8x32xf32>
    %320 = arith.mulf %310, %319 : vector<8x32xf32>
    %321 = arith.mulf %304, %312 : vector<8x32xf32>
    %322 = arith.addf %320, %321 : vector<8x32xf32>
    %323 = math.tanh %322 : vector<8x32xf32>
    %324 = arith.mulf %318, %323 : vector<8x32xf32>
    %c0_147 = arith.constant 0 : index
    %c0_148 = arith.constant 0 : index
    %325 = vector.load %arg9[%c0_147, %c0_148] : memref<8x32xf32, #tpu.memory_space<vmem>>, vector<8x32xf32>
    tpu.vector_store %arg9[%c0_147, %c0_148], %322 {strides = array<i32>} : memref<8x32xf32, #tpu.memory_space<vmem>>, vector<8x32xf32>,
    %c0_149 = arith.constant 0 : index
    %c0_150 = arith.constant 0 : index
    %326 = vector.load %arg8[%c0_149, %c0_150] : memref<8x32xf32, #tpu.memory_space<vmem>>, vector<8x32xf32>
    tpu.vector_store %arg8[%c0_149, %c0_150], %324 {strides = array<i32>} : memref<8x32xf32, #tpu.memory_space<vmem>>, vector<8x32xf32>,
    %327 = arith.index_cast %c7_i32 : i32 to index
    %c0_151 = arith.constant 0 : index
    %c0_152 = arith.constant 0 : index
    %328 = vector.load %arg6[%327, %c0_151, %c0_152] : memref<8x8x32xf32, #tpu.memory_space<vmem>>, vector<1x8x32xf32>
    %329 = vector.shape_cast %328 : vector<1x8x32xf32> to vector<8x32xf32>
    %330 = vector.shape_cast %324 : vector<8x32xf32> to vector<1x8x32xf32>
    tpu.vector_store %arg6[%327, %c0_151, %c0_152], %330 {strides = array<i32>} : memref<8x8x32xf32, #tpu.memory_space<vmem>>, vector<1x8x32xf32>,
    %c8_i32_153 = arith.constant 8 : i32
    %c0_154 = arith.constant 0 : index
    %c0_155 = arith.constant 0 : index
    %c0_156 = arith.constant 0 : index
    %331 = vector.load %arg6[%c0_154, %c0_155, %c0_156] : memref<8x8x32xf32, #tpu.memory_space<vmem>>, vector<8x8x32xf32>
    %cst_157 = arith.constant 0.000000e+00 : f32
    %332 = vector.broadcast %cst_157 : f32 to vector<8x8x32xf32>
    %333 = arith.maximumf %331, %332 : vector<8x8x32xf32>
    %c0_158 = arith.constant 0 : index
    %c0_159 = arith.constant 0 : index
    %c0_160 = arith.constant 0 : index
    %334 = vector.load %arg6[%c0_158, %c0_159, %c0_160] : memref<8x8x32xf32, #tpu.memory_space<vmem>>, vector<8x8x32xf32>
    tpu.vector_store %arg6[%c0_158, %c0_159, %c0_160], %333 {strides = array<i32>} : memref<8x8x32xf32, #tpu.memory_space<vmem>>, vector<8x8x32xf32>,
    return
  }
  func.func @transform_0(%arg0: i32, %arg1: i32) -> (i32, i32, i32) {
    %c0_i32 = arith.constant 0 : i32
    %c0_i32_0 = arith.constant 0 : i32
    return %arg1, %arg0, %c0_i32 : i32, i32, i32
  }
  func.func @transform_1(%arg0: i32, %arg1: i32) -> (i32, i32) {
    %c0_i32 = arith.constant 0 : i32
    %c0_i32_0 = arith.constant 0 : i32
    %c0_i32_1 = arith.constant 0 : i32
    return %c0_i32, %c0_i32_0 : i32, i32
  }
  func.func @transform_2(%arg0: i32, %arg1: i32) -> (i32, i32) {
    %c0_i32 = arith.constant 0 : i32
    %c0_i32_0 = arith.constant 0 : i32
    %c0_i32_1 = arith.constant 0 : i32
    return %c0_i32, %c0_i32_0 : i32, i32
  }
  func.func @transform_3(%arg0: i32, %arg1: i32) -> (i32, i32) {
    %c0_i32 = arith.constant 0 : i32
    %c0_i32_0 = arith.constant 0 : i32
    %c0_i32_1 = arith.constant 0 : i32
    return %c0_i32, %c0_i32_0 : i32, i32
  }
  func.func @transform_4(%arg0: i32, %arg1: i32) -> (i32, i32, i32) {
    %c0_i32 = arith.constant 0 : i32
    %c0_i32_0 = arith.constant 0 : i32
    return %arg1, %arg0, %c0_i32 : i32, i32, i32
  }
}

module attributes {stable_mosaic.version = 11 : i64} {
  func.func @kernel(%arg0: i32, %arg1: i32, %arg2: memref<8x8x32xf32, #tpu.memory_space<vmem>>, %arg3: memref<32x64xf32, #tpu.memory_space<vmem>>, %arg4: memref<16x64xf32, #tpu.memory_space<vmem>>, %arg5: memref<1x64xf32, #tpu.memory_space<vmem>>, %arg6: memref<8x8x16xf32, #tpu.memory_space<vmem>>, %arg7: memref<64x64xf32, #tpu.memory_space<vmem>>, %arg8: memref<8x16xf32, #tpu.memory_space<vmem>>, %arg9: memref<8x16xf32, #tpu.memory_space<vmem>>) attributes {dimension_semantics = [#tpu.dimension_semantics<parallel>, #tpu.dimension_semantics<arbitrary>], iteration_bounds = array<i64: 1, 1>, scalar_prefetch = 0 : i64, scratch_operands = 3 : i64, tpu.core_type = #tpu.core_type<tc>, window_params = [{transform_indices = @transform_0, window_bounds = array<i64: 8, 8, 32>}, {pipeline_mode = #tpu.pipeline_mode<synchronous>, transform_indices = @transform_1, window_bounds = array<i64: 32, 64>}, {pipeline_mode = #tpu.pipeline_mode<synchronous>, transform_indices = @transform_2, window_bounds = array<i64: 16, 64>}, {pipeline_mode = #tpu.pipeline_mode<synchronous>, transform_indices = @transform_3, window_bounds = array<i64: 1, 64>}, {transform_indices = @transform_4, window_bounds = array<i64: 8, 8, 16>}]} {
    %c0_i32 = arith.constant 0 : i32
    %0 = arith.cmpi eq, %arg1, %c0_i32 : i32
    %1 = arith.extui %0 : i1 to i32
    %c0_i32_0 = arith.constant 0 : i32
    %2 = arith.cmpi ne, %1, %c0_i32_0 : i32
    scf.if %2 {
      %cst_161 = arith.constant 0.000000e+00 : f32
      %338 = vector.broadcast %cst_161 : f32 to vector<8x16xf32>
      %c0_162 = arith.constant 0 : index
      %c0_163 = arith.constant 0 : index
      %339 = vector.load %arg8[%c0_162, %c0_163] : memref<8x16xf32, #tpu.memory_space<vmem>>, vector<8x16xf32>
      tpu.vector_store %arg8[%c0_162, %c0_163], %338 {strides = array<i32>} : memref<8x16xf32, #tpu.memory_space<vmem>>, vector<8x16xf32>,
      %cst_164 = arith.constant 0.000000e+00 : f32
      %340 = vector.broadcast %cst_164 : f32 to vector<8x16xf32>
      %c0_165 = arith.constant 0 : index
      %c0_166 = arith.constant 0 : index
      %341 = vector.load %arg9[%c0_165, %c0_166] : memref<8x16xf32, #tpu.memory_space<vmem>>, vector<8x16xf32>
      tpu.vector_store %arg9[%c0_165, %c0_166], %340 {strides = array<i32>} : memref<8x16xf32, #tpu.memory_space<vmem>>, vector<8x16xf32>,
    } else {
    }
    %c0 = arith.constant 0 : index
    %c0_1 = arith.constant 0 : index
    %c0_2 = arith.constant 0 : index
    %3 = vector.load %arg2[%c0, %c0_1, %c0_2] : memref<8x8x32xf32, #tpu.memory_space<vmem>>, vector<8x8x32xf32>
    %4 = vector.shape_cast %3 : vector<8x8x32xf32> to vector<64x32xf32>
    %c0_3 = arith.constant 0 : index
    %c0_4 = arith.constant 0 : index
    %5 = vector.load %arg3[%c0_3, %c0_4] : memref<32x64xf32, #tpu.memory_space<vmem>>, vector<32x64xf32>
    %cst = arith.constant dense<0.000000e+00> : vector<64x64xf32>
    %6 = tpu.matmul %4, %5, %cst {dimension_numbers = #tpu.dot_dimension_numbers<[1], [0], [0], [1], [0, 0, 1, 1], [], []>} : vector<64x32xf32>, vector<32x64xf32>, vector<64x64xf32> -> vector<64x64xf32>
    %c0_5 = arith.constant 0 : index
    %c0_6 = arith.constant 0 : index
    %7 = vector.load %arg5[%c0_5, %c0_6] : memref<1x64xf32, #tpu.memory_space<vmem>>, vector<1x64xf32>
    %8 = vector.broadcast %7 : vector<1x64xf32> to vector<64x64xf32>
    %9 = arith.addf %6, %8 : vector<64x64xf32>
    %c0_7 = arith.constant 0 : index
    %c0_8 = arith.constant 0 : index
    %10 = vector.load %arg7[%c0_7, %c0_8] : memref<64x64xf32, #tpu.memory_space<vmem>>, vector<64x64xf32>
    tpu.vector_store %arg7[%c0_7, %c0_8], %9 {strides = array<i32>} : memref<64x64xf32, #tpu.memory_space<vmem>>, vector<64x64xf32>,
    %c0_i32_9 = arith.constant 0 : i32
    %c8_i32 = arith.constant 8 : i32
    %11 = arith.muli %c0_i32_9, %c8_i32 : i32
    %12 = tpu.assume_multiple %11, 8 : i32
    %13 = arith.index_cast %12 : i32 to index
    %c0_10 = arith.constant 0 : index
    %14 = vector.load %arg7[%13, %c0_10] : memref<64x64xf32, #tpu.memory_space<vmem>>, vector<8x64xf32>
    %c0_11 = arith.constant 0 : index
    %c0_12 = arith.constant 0 : index
    %15 = vector.load %arg8[%c0_11, %c0_12] : memref<8x16xf32, #tpu.memory_space<vmem>>, vector<8x16xf32>
    %c0_13 = arith.constant 0 : index
    %c0_14 = arith.constant 0 : index
    %16 = vector.load %arg4[%c0_13, %c0_14] : memref<16x64xf32, #tpu.memory_space<vmem>>, vector<16x64xf32>
    %cst_15 = arith.constant dense<0.000000e+00> : vector<8x64xf32>
    %17 = tpu.matmul %15, %16, %cst_15 {dimension_numbers = #tpu.dot_dimension_numbers<[1], [0], [0], [1], [0, 0, 1, 1], [], []>} : vector<8x16xf32>, vector<16x64xf32>, vector<8x64xf32> -> vector<8x64xf32>
    %18 = arith.addf %14, %17 : vector<8x64xf32>
    %19 = vector.extract_strided_slice %18 {offsets = [0, 0], sizes = [8, 16], strides = [1, 1]} : vector<8x64xf32> to vector<8x16xf32>
    %20 = arith.negf %19 : vector<8x16xf32>
    %21 = math.exp %20 : vector<8x16xf32>
    %cst_16 = arith.constant 1.000000e+00 : f32
    %22 = vector.broadcast %cst_16 : f32 to vector<8x16xf32>
    %23 = arith.addf %22, %21 : vector<8x16xf32>
    %24 = arith.divf %22, %23 : vector<8x16xf32>
    %25 = vector.extract_strided_slice %18 {offsets = [0, 16], sizes = [8, 16], strides = [1, 1]} : vector<8x64xf32> to vector<8x16xf32>
    %26 = arith.negf %25 : vector<8x16xf32>
    %27 = math.exp %26 : vector<8x16xf32>
    %cst_17 = arith.constant 1.000000e+00 : f32
    %28 = vector.broadcast %cst_17 : f32 to vector<8x16xf32>
    %29 = arith.addf %28, %27 : vector<8x16xf32>
    %30 = arith.divf %28, %29 : vector<8x16xf32>
    %31 = vector.extract_strided_slice %18 {offsets = [0, 32], sizes = [8, 16], strides = [1, 1]} : vector<8x64xf32> to vector<8x16xf32>
    %32 = math.tanh %31 : vector<8x16xf32>
    %33 = vector.extract_strided_slice %18 {offsets = [0, 48], sizes = [8, 16], strides = [1, 1]} : vector<8x64xf32> to vector<8x16xf32>
    %34 = arith.negf %33 : vector<8x16xf32>
    %35 = math.exp %34 : vector<8x16xf32>
    %cst_18 = arith.constant 1.000000e+00 : f32
    %36 = vector.broadcast %cst_18 : f32 to vector<8x16xf32>
    %37 = arith.addf %36, %35 : vector<8x16xf32>
    %38 = arith.divf %36, %37 : vector<8x16xf32>
    %c0_19 = arith.constant 0 : index
    %c0_20 = arith.constant 0 : index
    %39 = vector.load %arg9[%c0_19, %c0_20] : memref<8x16xf32, #tpu.memory_space<vmem>>, vector<8x16xf32>
    %40 = arith.mulf %30, %39 : vector<8x16xf32>
    %41 = arith.mulf %24, %32 : vector<8x16xf32>
    %42 = arith.addf %40, %41 : vector<8x16xf32>
    %43 = math.tanh %42 : vector<8x16xf32>
    %44 = arith.mulf %38, %43 : vector<8x16xf32>
    %c0_21 = arith.constant 0 : index
    %c0_22 = arith.constant 0 : index
    %45 = vector.load %arg9[%c0_21, %c0_22] : memref<8x16xf32, #tpu.memory_space<vmem>>, vector<8x16xf32>
    tpu.vector_store %arg9[%c0_21, %c0_22], %42 {strides = array<i32>} : memref<8x16xf32, #tpu.memory_space<vmem>>, vector<8x16xf32>,
    %c0_23 = arith.constant 0 : index
    %c0_24 = arith.constant 0 : index
    %46 = vector.load %arg8[%c0_23, %c0_24] : memref<8x16xf32, #tpu.memory_space<vmem>>, vector<8x16xf32>
    tpu.vector_store %arg8[%c0_23, %c0_24], %44 {strides = array<i32>} : memref<8x16xf32, #tpu.memory_space<vmem>>, vector<8x16xf32>,
    %47 = arith.index_cast %c0_i32_9 : i32 to index
    %c0_25 = arith.constant 0 : index
    %c0_26 = arith.constant 0 : index
    %48 = vector.load %arg6[%47, %c0_25, %c0_26] : memref<8x8x16xf32, #tpu.memory_space<vmem>>, vector<1x8x16xf32>
    %49 = vector.shape_cast %48 : vector<1x8x16xf32> to vector<8x16xf32>
    %50 = vector.shape_cast %44 : vector<8x16xf32> to vector<1x8x16xf32>
    tpu.vector_store %arg6[%47, %c0_25, %c0_26], %50 {strides = array<i32>} : memref<8x8x16xf32, #tpu.memory_space<vmem>>, vector<1x8x16xf32>,
    %c1_i32 = arith.constant 1 : i32
    %c8_i32_27 = arith.constant 8 : i32
    %51 = arith.muli %c1_i32, %c8_i32_27 : i32
    %52 = tpu.assume_multiple %51, 8 : i32
    %53 = arith.index_cast %52 : i32 to index
    %c0_28 = arith.constant 0 : index
    %54 = vector.load %arg7[%53, %c0_28] : memref<64x64xf32, #tpu.memory_space<vmem>>, vector<8x64xf32>
    %c0_29 = arith.constant 0 : index
    %c0_30 = arith.constant 0 : index
    %55 = vector.load %arg8[%c0_29, %c0_30] : memref<8x16xf32, #tpu.memory_space<vmem>>, vector<8x16xf32>
    %c0_31 = arith.constant 0 : index
    %c0_32 = arith.constant 0 : index
    %56 = vector.load %arg4[%c0_31, %c0_32] : memref<16x64xf32, #tpu.memory_space<vmem>>, vector<16x64xf32>
    %cst_33 = arith.constant dense<0.000000e+00> : vector<8x64xf32>
    %57 = tpu.matmul %55, %56, %cst_33 {dimension_numbers = #tpu.dot_dimension_numbers<[1], [0], [0], [1], [0, 0, 1, 1], [], []>} : vector<8x16xf32>, vector<16x64xf32>, vector<8x64xf32> -> vector<8x64xf32>
    %58 = arith.addf %54, %57 : vector<8x64xf32>
    %59 = vector.extract_strided_slice %58 {offsets = [0, 0], sizes = [8, 16], strides = [1, 1]} : vector<8x64xf32> to vector<8x16xf32>
    %60 = arith.negf %59 : vector<8x16xf32>
    %61 = math.exp %60 : vector<8x16xf32>
    %cst_34 = arith.constant 1.000000e+00 : f32
    %62 = vector.broadcast %cst_34 : f32 to vector<8x16xf32>
    %63 = arith.addf %62, %61 : vector<8x16xf32>
    %64 = arith.divf %62, %63 : vector<8x16xf32>
    %65 = vector.extract_strided_slice %58 {offsets = [0, 16], sizes = [8, 16], strides = [1, 1]} : vector<8x64xf32> to vector<8x16xf32>
    %66 = arith.negf %65 : vector<8x16xf32>
    %67 = math.exp %66 : vector<8x16xf32>
    %cst_35 = arith.constant 1.000000e+00 : f32
    %68 = vector.broadcast %cst_35 : f32 to vector<8x16xf32>
    %69 = arith.addf %68, %67 : vector<8x16xf32>
    %70 = arith.divf %68, %69 : vector<8x16xf32>
    %71 = vector.extract_strided_slice %58 {offsets = [0, 32], sizes = [8, 16], strides = [1, 1]} : vector<8x64xf32> to vector<8x16xf32>
    %72 = math.tanh %71 : vector<8x16xf32>
    %73 = vector.extract_strided_slice %58 {offsets = [0, 48], sizes = [8, 16], strides = [1, 1]} : vector<8x64xf32> to vector<8x16xf32>
    %74 = arith.negf %73 : vector<8x16xf32>
    %75 = math.exp %74 : vector<8x16xf32>
    %cst_36 = arith.constant 1.000000e+00 : f32
    %76 = vector.broadcast %cst_36 : f32 to vector<8x16xf32>
    %77 = arith.addf %76, %75 : vector<8x16xf32>
    %78 = arith.divf %76, %77 : vector<8x16xf32>
    %c0_37 = arith.constant 0 : index
    %c0_38 = arith.constant 0 : index
    %79 = vector.load %arg9[%c0_37, %c0_38] : memref<8x16xf32, #tpu.memory_space<vmem>>, vector<8x16xf32>
    %80 = arith.mulf %70, %79 : vector<8x16xf32>
    %81 = arith.mulf %64, %72 : vector<8x16xf32>
    %82 = arith.addf %80, %81 : vector<8x16xf32>
    %83 = math.tanh %82 : vector<8x16xf32>
    %84 = arith.mulf %78, %83 : vector<8x16xf32>
    %c0_39 = arith.constant 0 : index
    %c0_40 = arith.constant 0 : index
    %85 = vector.load %arg9[%c0_39, %c0_40] : memref<8x16xf32, #tpu.memory_space<vmem>>, vector<8x16xf32>
    tpu.vector_store %arg9[%c0_39, %c0_40], %82 {strides = array<i32>} : memref<8x16xf32, #tpu.memory_space<vmem>>, vector<8x16xf32>,
    %c0_41 = arith.constant 0 : index
    %c0_42 = arith.constant 0 : index
    %86 = vector.load %arg8[%c0_41, %c0_42] : memref<8x16xf32, #tpu.memory_space<vmem>>, vector<8x16xf32>
    tpu.vector_store %arg8[%c0_41, %c0_42], %84 {strides = array<i32>} : memref<8x16xf32, #tpu.memory_space<vmem>>, vector<8x16xf32>,
    %87 = arith.index_cast %c1_i32 : i32 to index
    %c0_43 = arith.constant 0 : index
    %c0_44 = arith.constant 0 : index
    %88 = vector.load %arg6[%87, %c0_43, %c0_44] : memref<8x8x16xf32, #tpu.memory_space<vmem>>, vector<1x8x16xf32>
    %89 = vector.shape_cast %88 : vector<1x8x16xf32> to vector<8x16xf32>
    %90 = vector.shape_cast %84 : vector<8x16xf32> to vector<1x8x16xf32>
    tpu.vector_store %arg6[%87, %c0_43, %c0_44], %90 {strides = array<i32>} : memref<8x8x16xf32, #tpu.memory_space<vmem>>, vector<1x8x16xf32>,
    %c2_i32 = arith.constant 2 : i32
    %c8_i32_45 = arith.constant 8 : i32
    %91 = arith.muli %c2_i32, %c8_i32_45 : i32
    %92 = tpu.assume_multiple %91, 8 : i32
    %93 = arith.index_cast %92 : i32 to index
    %c0_46 = arith.constant 0 : index
    %94 = vector.load %arg7[%93, %c0_46] : memref<64x64xf32, #tpu.memory_space<vmem>>, vector<8x64xf32>
    %c0_47 = arith.constant 0 : index
    %c0_48 = arith.constant 0 : index
    %95 = vector.load %arg8[%c0_47, %c0_48] : memref<8x16xf32, #tpu.memory_space<vmem>>, vector<8x16xf32>
    %c0_49 = arith.constant 0 : index
    %c0_50 = arith.constant 0 : index
    %96 = vector.load %arg4[%c0_49, %c0_50] : memref<16x64xf32, #tpu.memory_space<vmem>>, vector<16x64xf32>
    %cst_51 = arith.constant dense<0.000000e+00> : vector<8x64xf32>
    %97 = tpu.matmul %95, %96, %cst_51 {dimension_numbers = #tpu.dot_dimension_numbers<[1], [0], [0], [1], [0, 0, 1, 1], [], []>} : vector<8x16xf32>, vector<16x64xf32>, vector<8x64xf32> -> vector<8x64xf32>
    %98 = arith.addf %94, %97 : vector<8x64xf32>
    %99 = vector.extract_strided_slice %98 {offsets = [0, 0], sizes = [8, 16], strides = [1, 1]} : vector<8x64xf32> to vector<8x16xf32>
    %100 = arith.negf %99 : vector<8x16xf32>
    %101 = math.exp %100 : vector<8x16xf32>
    %cst_52 = arith.constant 1.000000e+00 : f32
    %102 = vector.broadcast %cst_52 : f32 to vector<8x16xf32>
    %103 = arith.addf %102, %101 : vector<8x16xf32>
    %104 = arith.divf %102, %103 : vector<8x16xf32>
    %105 = vector.extract_strided_slice %98 {offsets = [0, 16], sizes = [8, 16], strides = [1, 1]} : vector<8x64xf32> to vector<8x16xf32>
    %106 = arith.negf %105 : vector<8x16xf32>
    %107 = math.exp %106 : vector<8x16xf32>
    %cst_53 = arith.constant 1.000000e+00 : f32
    %108 = vector.broadcast %cst_53 : f32 to vector<8x16xf32>
    %109 = arith.addf %108, %107 : vector<8x16xf32>
    %110 = arith.divf %108, %109 : vector<8x16xf32>
    %111 = vector.extract_strided_slice %98 {offsets = [0, 32], sizes = [8, 16], strides = [1, 1]} : vector<8x64xf32> to vector<8x16xf32>
    %112 = math.tanh %111 : vector<8x16xf32>
    %113 = vector.extract_strided_slice %98 {offsets = [0, 48], sizes = [8, 16], strides = [1, 1]} : vector<8x64xf32> to vector<8x16xf32>
    %114 = arith.negf %113 : vector<8x16xf32>
    %115 = math.exp %114 : vector<8x16xf32>
    %cst_54 = arith.constant 1.000000e+00 : f32
    %116 = vector.broadcast %cst_54 : f32 to vector<8x16xf32>
    %117 = arith.addf %116, %115 : vector<8x16xf32>
    %118 = arith.divf %116, %117 : vector<8x16xf32>
    %c0_55 = arith.constant 0 : index
    %c0_56 = arith.constant 0 : index
    %119 = vector.load %arg9[%c0_55, %c0_56] : memref<8x16xf32, #tpu.memory_space<vmem>>, vector<8x16xf32>
    %120 = arith.mulf %110, %119 : vector<8x16xf32>
    %121 = arith.mulf %104, %112 : vector<8x16xf32>
    %122 = arith.addf %120, %121 : vector<8x16xf32>
    %123 = math.tanh %122 : vector<8x16xf32>
    %124 = arith.mulf %118, %123 : vector<8x16xf32>
    %c0_57 = arith.constant 0 : index
    %c0_58 = arith.constant 0 : index
    %125 = vector.load %arg9[%c0_57, %c0_58] : memref<8x16xf32, #tpu.memory_space<vmem>>, vector<8x16xf32>
    tpu.vector_store %arg9[%c0_57, %c0_58], %122 {strides = array<i32>} : memref<8x16xf32, #tpu.memory_space<vmem>>, vector<8x16xf32>,
    %c0_59 = arith.constant 0 : index
    %c0_60 = arith.constant 0 : index
    %126 = vector.load %arg8[%c0_59, %c0_60] : memref<8x16xf32, #tpu.memory_space<vmem>>, vector<8x16xf32>
    tpu.vector_store %arg8[%c0_59, %c0_60], %124 {strides = array<i32>} : memref<8x16xf32, #tpu.memory_space<vmem>>, vector<8x16xf32>,
    %127 = arith.index_cast %c2_i32 : i32 to index
    %c0_61 = arith.constant 0 : index
    %c0_62 = arith.constant 0 : index
    %128 = vector.load %arg6[%127, %c0_61, %c0_62] : memref<8x8x16xf32, #tpu.memory_space<vmem>>, vector<1x8x16xf32>
    %129 = vector.shape_cast %128 : vector<1x8x16xf32> to vector<8x16xf32>
    %130 = vector.shape_cast %124 : vector<8x16xf32> to vector<1x8x16xf32>
    tpu.vector_store %arg6[%127, %c0_61, %c0_62], %130 {strides = array<i32>} : memref<8x8x16xf32, #tpu.memory_space<vmem>>, vector<1x8x16xf32>,
    %c3_i32 = arith.constant 3 : i32
    %c8_i32_63 = arith.constant 8 : i32
    %131 = arith.muli %c3_i32, %c8_i32_63 : i32
    %132 = tpu.assume_multiple %131, 8 : i32
    %133 = arith.index_cast %132 : i32 to index
    %c0_64 = arith.constant 0 : index
    %134 = vector.load %arg7[%133, %c0_64] : memref<64x64xf32, #tpu.memory_space<vmem>>, vector<8x64xf32>
    %c0_65 = arith.constant 0 : index
    %c0_66 = arith.constant 0 : index
    %135 = vector.load %arg8[%c0_65, %c0_66] : memref<8x16xf32, #tpu.memory_space<vmem>>, vector<8x16xf32>
    %c0_67 = arith.constant 0 : index
    %c0_68 = arith.constant 0 : index
    %136 = vector.load %arg4[%c0_67, %c0_68] : memref<16x64xf32, #tpu.memory_space<vmem>>, vector<16x64xf32>
    %cst_69 = arith.constant dense<0.000000e+00> : vector<8x64xf32>
    %137 = tpu.matmul %135, %136, %cst_69 {dimension_numbers = #tpu.dot_dimension_numbers<[1], [0], [0], [1], [0, 0, 1, 1], [], []>} : vector<8x16xf32>, vector<16x64xf32>, vector<8x64xf32> -> vector<8x64xf32>
    %138 = arith.addf %134, %137 : vector<8x64xf32>
    %139 = vector.extract_strided_slice %138 {offsets = [0, 0], sizes = [8, 16], strides = [1, 1]} : vector<8x64xf32> to vector<8x16xf32>
    %140 = arith.negf %139 : vector<8x16xf32>
    %141 = math.exp %140 : vector<8x16xf32>
    %cst_70 = arith.constant 1.000000e+00 : f32
    %142 = vector.broadcast %cst_70 : f32 to vector<8x16xf32>
    %143 = arith.addf %142, %141 : vector<8x16xf32>
    %144 = arith.divf %142, %143 : vector<8x16xf32>
    %145 = vector.extract_strided_slice %138 {offsets = [0, 16], sizes = [8, 16], strides = [1, 1]} : vector<8x64xf32> to vector<8x16xf32>
    %146 = arith.negf %145 : vector<8x16xf32>
    %147 = math.exp %146 : vector<8x16xf32>
    %cst_71 = arith.constant 1.000000e+00 : f32
    %148 = vector.broadcast %cst_71 : f32 to vector<8x16xf32>
    %149 = arith.addf %148, %147 : vector<8x16xf32>
    %150 = arith.divf %148, %149 : vector<8x16xf32>
    %151 = vector.extract_strided_slice %138 {offsets = [0, 32], sizes = [8, 16], strides = [1, 1]} : vector<8x64xf32> to vector<8x16xf32>
    %152 = math.tanh %151 : vector<8x16xf32>
    %153 = vector.extract_strided_slice %138 {offsets = [0, 48], sizes = [8, 16], strides = [1, 1]} : vector<8x64xf32> to vector<8x16xf32>
    %154 = arith.negf %153 : vector<8x16xf32>
    %155 = math.exp %154 : vector<8x16xf32>
    %cst_72 = arith.constant 1.000000e+00 : f32
    %156 = vector.broadcast %cst_72 : f32 to vector<8x16xf32>
    %157 = arith.addf %156, %155 : vector<8x16xf32>
    %158 = arith.divf %156, %157 : vector<8x16xf32>
    %c0_73 = arith.constant 0 : index
    %c0_74 = arith.constant 0 : index
    %159 = vector.load %arg9[%c0_73, %c0_74] : memref<8x16xf32, #tpu.memory_space<vmem>>, vector<8x16xf32>
    %160 = arith.mulf %150, %159 : vector<8x16xf32>
    %161 = arith.mulf %144, %152 : vector<8x16xf32>
    %162 = arith.addf %160, %161 : vector<8x16xf32>
    %163 = math.tanh %162 : vector<8x16xf32>
    %164 = arith.mulf %158, %163 : vector<8x16xf32>
    %c0_75 = arith.constant 0 : index
    %c0_76 = arith.constant 0 : index
    %165 = vector.load %arg9[%c0_75, %c0_76] : memref<8x16xf32, #tpu.memory_space<vmem>>, vector<8x16xf32>
    tpu.vector_store %arg9[%c0_75, %c0_76], %162 {strides = array<i32>} : memref<8x16xf32, #tpu.memory_space<vmem>>, vector<8x16xf32>,
    %c0_77 = arith.constant 0 : index
    %c0_78 = arith.constant 0 : index
    %166 = vector.load %arg8[%c0_77, %c0_78] : memref<8x16xf32, #tpu.memory_space<vmem>>, vector<8x16xf32>
    tpu.vector_store %arg8[%c0_77, %c0_78], %164 {strides = array<i32>} : memref<8x16xf32, #tpu.memory_space<vmem>>, vector<8x16xf32>,
    %167 = arith.index_cast %c3_i32 : i32 to index
    %c0_79 = arith.constant 0 : index
    %c0_80 = arith.constant 0 : index
    %168 = vector.load %arg6[%167, %c0_79, %c0_80] : memref<8x8x16xf32, #tpu.memory_space<vmem>>, vector<1x8x16xf32>
    %169 = vector.shape_cast %168 : vector<1x8x16xf32> to vector<8x16xf32>
    %170 = vector.shape_cast %164 : vector<8x16xf32> to vector<1x8x16xf32>
    tpu.vector_store %arg6[%167, %c0_79, %c0_80], %170 {strides = array<i32>} : memref<8x8x16xf32, #tpu.memory_space<vmem>>, vector<1x8x16xf32>,
    %c4_i32 = arith.constant 4 : i32
    %c8_i32_81 = arith.constant 8 : i32
    %171 = arith.muli %c4_i32, %c8_i32_81 : i32
    %172 = tpu.assume_multiple %171, 8 : i32
    %173 = arith.index_cast %172 : i32 to index
    %c0_82 = arith.constant 0 : index
    %174 = vector.load %arg7[%173, %c0_82] : memref<64x64xf32, #tpu.memory_space<vmem>>, vector<8x64xf32>
    %c0_83 = arith.constant 0 : index
    %c0_84 = arith.constant 0 : index
    %175 = vector.load %arg8[%c0_83, %c0_84] : memref<8x16xf32, #tpu.memory_space<vmem>>, vector<8x16xf32>
    %c0_85 = arith.constant 0 : index
    %c0_86 = arith.constant 0 : index
    %176 = vector.load %arg4[%c0_85, %c0_86] : memref<16x64xf32, #tpu.memory_space<vmem>>, vector<16x64xf32>
    %cst_87 = arith.constant dense<0.000000e+00> : vector<8x64xf32>
    %177 = tpu.matmul %175, %176, %cst_87 {dimension_numbers = #tpu.dot_dimension_numbers<[1], [0], [0], [1], [0, 0, 1, 1], [], []>} : vector<8x16xf32>, vector<16x64xf32>, vector<8x64xf32> -> vector<8x64xf32>
    %178 = arith.addf %174, %177 : vector<8x64xf32>
    %179 = vector.extract_strided_slice %178 {offsets = [0, 0], sizes = [8, 16], strides = [1, 1]} : vector<8x64xf32> to vector<8x16xf32>
    %180 = arith.negf %179 : vector<8x16xf32>
    %181 = math.exp %180 : vector<8x16xf32>
    %cst_88 = arith.constant 1.000000e+00 : f32
    %182 = vector.broadcast %cst_88 : f32 to vector<8x16xf32>
    %183 = arith.addf %182, %181 : vector<8x16xf32>
    %184 = arith.divf %182, %183 : vector<8x16xf32>
    %185 = vector.extract_strided_slice %178 {offsets = [0, 16], sizes = [8, 16], strides = [1, 1]} : vector<8x64xf32> to vector<8x16xf32>
    %186 = arith.negf %185 : vector<8x16xf32>
    %187 = math.exp %186 : vector<8x16xf32>
    %cst_89 = arith.constant 1.000000e+00 : f32
    %188 = vector.broadcast %cst_89 : f32 to vector<8x16xf32>
    %189 = arith.addf %188, %187 : vector<8x16xf32>
    %190 = arith.divf %188, %189 : vector<8x16xf32>
    %191 = vector.extract_strided_slice %178 {offsets = [0, 32], sizes = [8, 16], strides = [1, 1]} : vector<8x64xf32> to vector<8x16xf32>
    %192 = math.tanh %191 : vector<8x16xf32>
    %193 = vector.extract_strided_slice %178 {offsets = [0, 48], sizes = [8, 16], strides = [1, 1]} : vector<8x64xf32> to vector<8x16xf32>
    %194 = arith.negf %193 : vector<8x16xf32>
    %195 = math.exp %194 : vector<8x16xf32>
    %cst_90 = arith.constant 1.000000e+00 : f32
    %196 = vector.broadcast %cst_90 : f32 to vector<8x16xf32>
    %197 = arith.addf %196, %195 : vector<8x16xf32>
    %198 = arith.divf %196, %197 : vector<8x16xf32>
    %c0_91 = arith.constant 0 : index
    %c0_92 = arith.constant 0 : index
    %199 = vector.load %arg9[%c0_91, %c0_92] : memref<8x16xf32, #tpu.memory_space<vmem>>, vector<8x16xf32>
    %200 = arith.mulf %190, %199 : vector<8x16xf32>
    %201 = arith.mulf %184, %192 : vector<8x16xf32>
    %202 = arith.addf %200, %201 : vector<8x16xf32>
    %203 = math.tanh %202 : vector<8x16xf32>
    %204 = arith.mulf %198, %203 : vector<8x16xf32>
    %c0_93 = arith.constant 0 : index
    %c0_94 = arith.constant 0 : index
    %205 = vector.load %arg9[%c0_93, %c0_94] : memref<8x16xf32, #tpu.memory_space<vmem>>, vector<8x16xf32>
    tpu.vector_store %arg9[%c0_93, %c0_94], %202 {strides = array<i32>} : memref<8x16xf32, #tpu.memory_space<vmem>>, vector<8x16xf32>,
    %c0_95 = arith.constant 0 : index
    %c0_96 = arith.constant 0 : index
    %206 = vector.load %arg8[%c0_95, %c0_96] : memref<8x16xf32, #tpu.memory_space<vmem>>, vector<8x16xf32>
    tpu.vector_store %arg8[%c0_95, %c0_96], %204 {strides = array<i32>} : memref<8x16xf32, #tpu.memory_space<vmem>>, vector<8x16xf32>,
    %207 = arith.index_cast %c4_i32 : i32 to index
    %c0_97 = arith.constant 0 : index
    %c0_98 = arith.constant 0 : index
    %208 = vector.load %arg6[%207, %c0_97, %c0_98] : memref<8x8x16xf32, #tpu.memory_space<vmem>>, vector<1x8x16xf32>
    %209 = vector.shape_cast %208 : vector<1x8x16xf32> to vector<8x16xf32>
    %210 = vector.shape_cast %204 : vector<8x16xf32> to vector<1x8x16xf32>
    tpu.vector_store %arg6[%207, %c0_97, %c0_98], %210 {strides = array<i32>} : memref<8x8x16xf32, #tpu.memory_space<vmem>>, vector<1x8x16xf32>,
    %c5_i32 = arith.constant 5 : i32
    %c8_i32_99 = arith.constant 8 : i32
    %211 = arith.muli %c5_i32, %c8_i32_99 : i32
    %212 = tpu.assume_multiple %211, 8 : i32
    %213 = arith.index_cast %212 : i32 to index
    %c0_100 = arith.constant 0 : index
    %214 = vector.load %arg7[%213, %c0_100] : memref<64x64xf32, #tpu.memory_space<vmem>>, vector<8x64xf32>
    %c0_101 = arith.constant 0 : index
    %c0_102 = arith.constant 0 : index
    %215 = vector.load %arg8[%c0_101, %c0_102] : memref<8x16xf32, #tpu.memory_space<vmem>>, vector<8x16xf32>
    %c0_103 = arith.constant 0 : index
    %c0_104 = arith.constant 0 : index
    %216 = vector.load %arg4[%c0_103, %c0_104] : memref<16x64xf32, #tpu.memory_space<vmem>>, vector<16x64xf32>
    %cst_105 = arith.constant dense<0.000000e+00> : vector<8x64xf32>
    %217 = tpu.matmul %215, %216, %cst_105 {dimension_numbers = #tpu.dot_dimension_numbers<[1], [0], [0], [1], [0, 0, 1, 1], [], []>} : vector<8x16xf32>, vector<16x64xf32>, vector<8x64xf32> -> vector<8x64xf32>
    %218 = arith.addf %214, %217 : vector<8x64xf32>
    %219 = vector.extract_strided_slice %218 {offsets = [0, 0], sizes = [8, 16], strides = [1, 1]} : vector<8x64xf32> to vector<8x16xf32>
    %220 = arith.negf %219 : vector<8x16xf32>
    %221 = math.exp %220 : vector<8x16xf32>
    %cst_106 = arith.constant 1.000000e+00 : f32
    %222 = vector.broadcast %cst_106 : f32 to vector<8x16xf32>
    %223 = arith.addf %222, %221 : vector<8x16xf32>
    %224 = arith.divf %222, %223 : vector<8x16xf32>
    %225 = vector.extract_strided_slice %218 {offsets = [0, 16], sizes = [8, 16], strides = [1, 1]} : vector<8x64xf32> to vector<8x16xf32>
    %226 = arith.negf %225 : vector<8x16xf32>
    %227 = math.exp %226 : vector<8x16xf32>
    %cst_107 = arith.constant 1.000000e+00 : f32
    %228 = vector.broadcast %cst_107 : f32 to vector<8x16xf32>
    %229 = arith.addf %228, %227 : vector<8x16xf32>
    %230 = arith.divf %228, %229 : vector<8x16xf32>
    %231 = vector.extract_strided_slice %218 {offsets = [0, 32], sizes = [8, 16], strides = [1, 1]} : vector<8x64xf32> to vector<8x16xf32>
    %232 = math.tanh %231 : vector<8x16xf32>
    %233 = vector.extract_strided_slice %218 {offsets = [0, 48], sizes = [8, 16], strides = [1, 1]} : vector<8x64xf32> to vector<8x16xf32>
    %234 = arith.negf %233 : vector<8x16xf32>
    %235 = math.exp %234 : vector<8x16xf32>
    %cst_108 = arith.constant 1.000000e+00 : f32
    %236 = vector.broadcast %cst_108 : f32 to vector<8x16xf32>
    %237 = arith.addf %236, %235 : vector<8x16xf32>
    %238 = arith.divf %236, %237 : vector<8x16xf32>
    %c0_109 = arith.constant 0 : index
    %c0_110 = arith.constant 0 : index
    %239 = vector.load %arg9[%c0_109, %c0_110] : memref<8x16xf32, #tpu.memory_space<vmem>>, vector<8x16xf32>
    %240 = arith.mulf %230, %239 : vector<8x16xf32>
    %241 = arith.mulf %224, %232 : vector<8x16xf32>
    %242 = arith.addf %240, %241 : vector<8x16xf32>
    %243 = math.tanh %242 : vector<8x16xf32>
    %244 = arith.mulf %238, %243 : vector<8x16xf32>
    %c0_111 = arith.constant 0 : index
    %c0_112 = arith.constant 0 : index
    %245 = vector.load %arg9[%c0_111, %c0_112] : memref<8x16xf32, #tpu.memory_space<vmem>>, vector<8x16xf32>
    tpu.vector_store %arg9[%c0_111, %c0_112], %242 {strides = array<i32>} : memref<8x16xf32, #tpu.memory_space<vmem>>, vector<8x16xf32>,
    %c0_113 = arith.constant 0 : index
    %c0_114 = arith.constant 0 : index
    %246 = vector.load %arg8[%c0_113, %c0_114] : memref<8x16xf32, #tpu.memory_space<vmem>>, vector<8x16xf32>
    tpu.vector_store %arg8[%c0_113, %c0_114], %244 {strides = array<i32>} : memref<8x16xf32, #tpu.memory_space<vmem>>, vector<8x16xf32>,
    %247 = arith.index_cast %c5_i32 : i32 to index
    %c0_115 = arith.constant 0 : index
    %c0_116 = arith.constant 0 : index
    %248 = vector.load %arg6[%247, %c0_115, %c0_116] : memref<8x8x16xf32, #tpu.memory_space<vmem>>, vector<1x8x16xf32>
    %249 = vector.shape_cast %248 : vector<1x8x16xf32> to vector<8x16xf32>
    %250 = vector.shape_cast %244 : vector<8x16xf32> to vector<1x8x16xf32>
    tpu.vector_store %arg6[%247, %c0_115, %c0_116], %250 {strides = array<i32>} : memref<8x8x16xf32, #tpu.memory_space<vmem>>, vector<1x8x16xf32>,
    %c6_i32 = arith.constant 6 : i32
    %c8_i32_117 = arith.constant 8 : i32
    %251 = arith.muli %c6_i32, %c8_i32_117 : i32
    %252 = tpu.assume_multiple %251, 8 : i32
    %253 = arith.index_cast %252 : i32 to index
    %c0_118 = arith.constant 0 : index
    %254 = vector.load %arg7[%253, %c0_118] : memref<64x64xf32, #tpu.memory_space<vmem>>, vector<8x64xf32>
    %c0_119 = arith.constant 0 : index
    %c0_120 = arith.constant 0 : index
    %255 = vector.load %arg8[%c0_119, %c0_120] : memref<8x16xf32, #tpu.memory_space<vmem>>, vector<8x16xf32>
    %c0_121 = arith.constant 0 : index
    %c0_122 = arith.constant 0 : index
    %256 = vector.load %arg4[%c0_121, %c0_122] : memref<16x64xf32, #tpu.memory_space<vmem>>, vector<16x64xf32>
    %cst_123 = arith.constant dense<0.000000e+00> : vector<8x64xf32>
    %257 = tpu.matmul %255, %256, %cst_123 {dimension_numbers = #tpu.dot_dimension_numbers<[1], [0], [0], [1], [0, 0, 1, 1], [], []>} : vector<8x16xf32>, vector<16x64xf32>, vector<8x64xf32> -> vector<8x64xf32>
    %258 = arith.addf %254, %257 : vector<8x64xf32>
    %259 = vector.extract_strided_slice %258 {offsets = [0, 0], sizes = [8, 16], strides = [1, 1]} : vector<8x64xf32> to vector<8x16xf32>
    %260 = arith.negf %259 : vector<8x16xf32>
    %261 = math.exp %260 : vector<8x16xf32>
    %cst_124 = arith.constant 1.000000e+00 : f32
    %262 = vector.broadcast %cst_124 : f32 to vector<8x16xf32>
    %263 = arith.addf %262, %261 : vector<8x16xf32>
    %264 = arith.divf %262, %263 : vector<8x16xf32>
    %265 = vector.extract_strided_slice %258 {offsets = [0, 16], sizes = [8, 16], strides = [1, 1]} : vector<8x64xf32> to vector<8x16xf32>
    %266 = arith.negf %265 : vector<8x16xf32>
    %267 = math.exp %266 : vector<8x16xf32>
    %cst_125 = arith.constant 1.000000e+00 : f32
    %268 = vector.broadcast %cst_125 : f32 to vector<8x16xf32>
    %269 = arith.addf %268, %267 : vector<8x16xf32>
    %270 = arith.divf %268, %269 : vector<8x16xf32>
    %271 = vector.extract_strided_slice %258 {offsets = [0, 32], sizes = [8, 16], strides = [1, 1]} : vector<8x64xf32> to vector<8x16xf32>
    %272 = math.tanh %271 : vector<8x16xf32>
    %273 = vector.extract_strided_slice %258 {offsets = [0, 48], sizes = [8, 16], strides = [1, 1]} : vector<8x64xf32> to vector<8x16xf32>
    %274 = arith.negf %273 : vector<8x16xf32>
    %275 = math.exp %274 : vector<8x16xf32>
    %cst_126 = arith.constant 1.000000e+00 : f32
    %276 = vector.broadcast %cst_126 : f32 to vector<8x16xf32>
    %277 = arith.addf %276, %275 : vector<8x16xf32>
    %278 = arith.divf %276, %277 : vector<8x16xf32>
    %c0_127 = arith.constant 0 : index
    %c0_128 = arith.constant 0 : index
    %279 = vector.load %arg9[%c0_127, %c0_128] : memref<8x16xf32, #tpu.memory_space<vmem>>, vector<8x16xf32>
    %280 = arith.mulf %270, %279 : vector<8x16xf32>
    %281 = arith.mulf %264, %272 : vector<8x16xf32>
    %282 = arith.addf %280, %281 : vector<8x16xf32>
    %283 = math.tanh %282 : vector<8x16xf32>
    %284 = arith.mulf %278, %283 : vector<8x16xf32>
    %c0_129 = arith.constant 0 : index
    %c0_130 = arith.constant 0 : index
    %285 = vector.load %arg9[%c0_129, %c0_130] : memref<8x16xf32, #tpu.memory_space<vmem>>, vector<8x16xf32>
    tpu.vector_store %arg9[%c0_129, %c0_130], %282 {strides = array<i32>} : memref<8x16xf32, #tpu.memory_space<vmem>>, vector<8x16xf32>,
    %c0_131 = arith.constant 0 : index
    %c0_132 = arith.constant 0 : index
    %286 = vector.load %arg8[%c0_131, %c0_132] : memref<8x16xf32, #tpu.memory_space<vmem>>, vector<8x16xf32>
    tpu.vector_store %arg8[%c0_131, %c0_132], %284 {strides = array<i32>} : memref<8x16xf32, #tpu.memory_space<vmem>>, vector<8x16xf32>,
    %287 = arith.index_cast %c6_i32 : i32 to index
    %c0_133 = arith.constant 0 : index
    %c0_134 = arith.constant 0 : index
    %288 = vector.load %arg6[%287, %c0_133, %c0_134] : memref<8x8x16xf32, #tpu.memory_space<vmem>>, vector<1x8x16xf32>
    %289 = vector.shape_cast %288 : vector<1x8x16xf32> to vector<8x16xf32>
    %290 = vector.shape_cast %284 : vector<8x16xf32> to vector<1x8x16xf32>
    tpu.vector_store %arg6[%287, %c0_133, %c0_134], %290 {strides = array<i32>} : memref<8x8x16xf32, #tpu.memory_space<vmem>>, vector<1x8x16xf32>,
    %c7_i32 = arith.constant 7 : i32
    %c8_i32_135 = arith.constant 8 : i32
    %291 = arith.muli %c7_i32, %c8_i32_135 : i32
    %292 = tpu.assume_multiple %291, 8 : i32
    %293 = arith.index_cast %292 : i32 to index
    %c0_136 = arith.constant 0 : index
    %294 = vector.load %arg7[%293, %c0_136] : memref<64x64xf32, #tpu.memory_space<vmem>>, vector<8x64xf32>
    %c0_137 = arith.constant 0 : index
    %c0_138 = arith.constant 0 : index
    %295 = vector.load %arg8[%c0_137, %c0_138] : memref<8x16xf32, #tpu.memory_space<vmem>>, vector<8x16xf32>
    %c0_139 = arith.constant 0 : index
    %c0_140 = arith.constant 0 : index
    %296 = vector.load %arg4[%c0_139, %c0_140] : memref<16x64xf32, #tpu.memory_space<vmem>>, vector<16x64xf32>
    %cst_141 = arith.constant dense<0.000000e+00> : vector<8x64xf32>
    %297 = tpu.matmul %295, %296, %cst_141 {dimension_numbers = #tpu.dot_dimension_numbers<[1], [0], [0], [1], [0, 0, 1, 1], [], []>} : vector<8x16xf32>, vector<16x64xf32>, vector<8x64xf32> -> vector<8x64xf32>
    %298 = arith.addf %294, %297 : vector<8x64xf32>
    %299 = vector.extract_strided_slice %298 {offsets = [0, 0], sizes = [8, 16], strides = [1, 1]} : vector<8x64xf32> to vector<8x16xf32>
    %300 = arith.negf %299 : vector<8x16xf32>
    %301 = math.exp %300 : vector<8x16xf32>
    %cst_142 = arith.constant 1.000000e+00 : f32
    %302 = vector.broadcast %cst_142 : f32 to vector<8x16xf32>
    %303 = arith.addf %302, %301 : vector<8x16xf32>
    %304 = arith.divf %302, %303 : vector<8x16xf32>
    %305 = vector.extract_strided_slice %298 {offsets = [0, 16], sizes = [8, 16], strides = [1, 1]} : vector<8x64xf32> to vector<8x16xf32>
    %306 = arith.negf %305 : vector<8x16xf32>
    %307 = math.exp %306 : vector<8x16xf32>
    %cst_143 = arith.constant 1.000000e+00 : f32
    %308 = vector.broadcast %cst_143 : f32 to vector<8x16xf32>
    %309 = arith.addf %308, %307 : vector<8x16xf32>
    %310 = arith.divf %308, %309 : vector<8x16xf32>
    %311 = vector.extract_strided_slice %298 {offsets = [0, 32], sizes = [8, 16], strides = [1, 1]} : vector<8x64xf32> to vector<8x16xf32>
    %312 = math.tanh %311 : vector<8x16xf32>
    %313 = vector.extract_strided_slice %298 {offsets = [0, 48], sizes = [8, 16], strides = [1, 1]} : vector<8x64xf32> to vector<8x16xf32>
    %314 = arith.negf %313 : vector<8x16xf32>
    %315 = math.exp %314 : vector<8x16xf32>
    %cst_144 = arith.constant 1.000000e+00 : f32
    %316 = vector.broadcast %cst_144 : f32 to vector<8x16xf32>
    %317 = arith.addf %316, %315 : vector<8x16xf32>
    %318 = arith.divf %316, %317 : vector<8x16xf32>
    %c0_145 = arith.constant 0 : index
    %c0_146 = arith.constant 0 : index
    %319 = vector.load %arg9[%c0_145, %c0_146] : memref<8x16xf32, #tpu.memory_space<vmem>>, vector<8x16xf32>
    %320 = arith.mulf %310, %319 : vector<8x16xf32>
    %321 = arith.mulf %304, %312 : vector<8x16xf32>
    %322 = arith.addf %320, %321 : vector<8x16xf32>
    %323 = math.tanh %322 : vector<8x16xf32>
    %324 = arith.mulf %318, %323 : vector<8x16xf32>
    %c0_147 = arith.constant 0 : index
    %c0_148 = arith.constant 0 : index
    %325 = vector.load %arg9[%c0_147, %c0_148] : memref<8x16xf32, #tpu.memory_space<vmem>>, vector<8x16xf32>
    tpu.vector_store %arg9[%c0_147, %c0_148], %322 {strides = array<i32>} : memref<8x16xf32, #tpu.memory_space<vmem>>, vector<8x16xf32>,
    %c0_149 = arith.constant 0 : index
    %c0_150 = arith.constant 0 : index
    %326 = vector.load %arg8[%c0_149, %c0_150] : memref<8x16xf32, #tpu.memory_space<vmem>>, vector<8x16xf32>
    tpu.vector_store %arg8[%c0_149, %c0_150], %324 {strides = array<i32>} : memref<8x16xf32, #tpu.memory_space<vmem>>, vector<8x16xf32>,
    %327 = arith.index_cast %c7_i32 : i32 to index
    %c0_151 = arith.constant 0 : index
    %c0_152 = arith.constant 0 : index
    %328 = vector.load %arg6[%327, %c0_151, %c0_152] : memref<8x8x16xf32, #tpu.memory_space<vmem>>, vector<1x8x16xf32>
    %329 = vector.shape_cast %328 : vector<1x8x16xf32> to vector<8x16xf32>
    %330 = vector.shape_cast %324 : vector<8x16xf32> to vector<1x8x16xf32>
    tpu.vector_store %arg6[%327, %c0_151, %c0_152], %330 {strides = array<i32>} : memref<8x8x16xf32, #tpu.memory_space<vmem>>, vector<1x8x16xf32>,
    %c8_i32_153 = arith.constant 8 : i32
    %c0_154 = arith.constant 0 : index
    %c0_155 = arith.constant 0 : index
    %c0_156 = arith.constant 0 : index
    %331 = vector.load %arg6[%c0_154, %c0_155, %c0_156] : memref<8x8x16xf32, #tpu.memory_space<vmem>>, vector<8x8x16xf32>
    %332 = arith.negf %331 : vector<8x8x16xf32>
    %333 = math.exp %332 : vector<8x8x16xf32>
    %cst_157 = arith.constant 1.000000e+00 : f32
    %334 = vector.broadcast %cst_157 : f32 to vector<8x8x16xf32>
    %335 = arith.addf %334, %333 : vector<8x8x16xf32>
    %336 = arith.divf %334, %335 : vector<8x8x16xf32>
    %c0_158 = arith.constant 0 : index
    %c0_159 = arith.constant 0 : index
    %c0_160 = arith.constant 0 : index
    %337 = vector.load %arg6[%c0_158, %c0_159, %c0_160] : memref<8x8x16xf32, #tpu.memory_space<vmem>>, vector<8x8x16xf32>
    tpu.vector_store %arg6[%c0_158, %c0_159, %c0_160], %336 {strides = array<i32>} : memref<8x8x16xf32, #tpu.memory_space<vmem>>, vector<8x8x16xf32>,
    return
  }
  func.func @transform_0(%arg0: i32, %arg1: i32) -> (i32, i32, i32) {
    %c0_i32 = arith.constant 0 : i32
    %c0_i32_0 = arith.constant 0 : i32
    return %arg1, %arg0, %c0_i32 : i32, i32, i32
  }
  func.func @transform_1(%arg0: i32, %arg1: i32) -> (i32, i32) {
    %c0_i32 = arith.constant 0 : i32
    %c0_i32_0 = arith.constant 0 : i32
    %c0_i32_1 = arith.constant 0 : i32
    return %c0_i32, %c0_i32_0 : i32, i32
  }
  func.func @transform_2(%arg0: i32, %arg1: i32) -> (i32, i32) {
    %c0_i32 = arith.constant 0 : i32
    %c0_i32_0 = arith.constant 0 : i32
    %c0_i32_1 = arith.constant 0 : i32
    return %c0_i32, %c0_i32_0 : i32, i32
  }
  func.func @transform_3(%arg0: i32, %arg1: i32) -> (i32, i32) {
    %c0_i32 = arith.constant 0 : i32
    %c0_i32_0 = arith.constant 0 : i32
    %c0_i32_1 = arith.constant 0 : i32
    return %c0_i32, %c0_i32_0 : i32, i32
  }
  func.func @transform_4(%arg0: i32, %arg1: i32) -> (i32, i32, i32) {
    %c0_i32 = arith.constant 0 : i32
    %c0_i32_0 = arith.constant 0 : i32
    return %arg1, %arg0, %c0_i32 : i32, i32, i32
  }
}

</mosaic_0001>

<bundles_post_ra>
// kernel: lstmae_forward.2
= control target key start
LH: loop header
LB: loop body
LE: loop exit
PB: predicated region body
PF: predicated region fallthrough
CT: control target
= control target key end

     0   :  { %vm41_vm0 = vcmask 130048   ;;  %v1490_v0 = vmov 0.0|0.0   ;;  %vm1491_vm1 = vmmov 0   ;;  %v1492_v4 = vmov 0.0   ;;  %s1493_s5 = smov 64   ;;  %s1494_s6 = smov 32   ;;  %s1815_s1 = inlined_call_operand.vmem [shape: f32[16,128], index: 1, kind: input, shape index: {}]   ;;  %s1816_s2 = inlined_call_operand.vmem [shape: f32[32,128], index: 2, kind: input, shape index: {}]   ;;  %s1817_s0 = inlined_call_operand.vmem [shape: f32[8,8,16], index: 0, kind: input, shape index: {}]   ;;  %s1818_s3 = inlined_call_operand.vmem [shape: f32[1,128], index: 3, kind: input, shape index: {}]   ;;  %s1819_s4 = inlined_call_operand.vmem [shape: f32[8,8,32], index: 4, kind: output, shape index: {}]  }
   0x1   :  { %1372 = vmatprep.subr.bf16.mxu1 %v1490_v0  ;;  %v32_v1 = vld [vmem:[%s1815_s1] sm:$0xff]  ;;  %v33_v2 = vld [vmem:[%s1815_s1 + $0x8] sm:$0xff]  ;;  %1288 = vmatprep.mubr.msk.f32.mxu1 %vm1491_vm1, %v1492_v4  ;;  %vm21_vm2 = vcmask 261120   ;;  %v183_v9 = vld [vmem:[%s1816_s2 + $0x10] sm:$0xff] }
   0x2   :  { %v181_v3 = vld [vmem:[%s1816_s2] sm:$0xff]  ;;  %v1368_v5 = vpack.c.bf16 %v33_v2, %v32_v1  ;;  %v182_v6 = vld [vmem:[%s1816_s2 + $0x8] sm:$0xff]  ;;  %22 = vst.msk [vmem:[#allocation3] sm:$0xff] %vm21_vm2, %v1492_v4  ;;  %23 = vst.msk [vmem:[#allocation4] sm:$0xff] %vm21_vm2, %v1492_v4 }
   0x3   :  { %v24_v7 = vld [vmem:[%s1817_s0] sm:$0xff]  ;;  %v1543_v8 = vpack.c.bf16 %v182_v6, %v181_v3  ;;  %v184_v10 = vld [vmem:[%s1816_s2 + $0x18] sm:$0xff]  ;;  %v25_v11 = vld [vmem:[%s1817_s0 + $0x8] sm:$0xff] }
   0x4   :  { %1268 = vmatprep.mubr.msk.f32.mxu0 %vm41_vm0, %v24_v7  ;;  %1369 = vmatprep.subr.bf16.mxu0 %v1368_v5  ;;  %v1556_v12 = vpack.c.bf16 %v184_v10, %v183_v9  ;;  %v1577_v14 = vld [vmem:[%s1818_s3] ss:$0 sm:$0xff]  ;;  %s1495_s3 = smov 96   ;;  %v26_v58 = vld [vmem:[%s1817_s0 + $0x10] sm:$0xff]  ;;  %v27_v59 = vld [vmem:[%s1817_s0 + $0x18] sm:$0xff] }
   0x5   :  { %1374 = vmatpush3.bf16.msra.mxu1 %v1543_v8  ;;  %1371 = vmatpush3.bf16.msra.mxu0 %v1368_v5  ;;  %v28_v60 = vld [vmem:[%s1817_s0 + $0x20] sm:$0xff]  ;;  %v29_v61 = vld [vmem:[%s1817_s0 + $0x28] sm:$0xff]  ;;  %v30_v62 = vld [vmem:[%s1817_s0 + $0x30] sm:$0xff] }
   0x6   :  { %1375 = vmatprep.subr.bf16.mxu1 %v1490_v0  ;;  %1384 = vmatprep.subr.bf16.mxu0 %v1490_v0  ;;  %v31_v63 = vld [vmem:[%s1817_s0 + $0x38] sm:$0xff] }
   0x8   :  { %1269 = vmatmul.mubr.msk.f32.vlgmr.msra.gmra.mrb[0].mxu0 %vm41_vm0, %v25_v11 }
   0x9   :  { %1377 = vmatpush3.bf16.msra.mxu1 %v1556_v12  ;;  %v180_v13 = vld [vmem:[#allocation3] sm:$0xff]  ;;  %1386 = vmatpush3.bf16.msra.mxu0 %v1543_v8  ;;  %v267_v22 = vld [vmem:[#allocation4] sm:$0xff] }
   0xa   :  { %1378 = vmatprep.subr.bf16.mxu1 %v1490_v0  ;;  %1387 = vmatprep.subr.bf16.mxu0 %v1490_v0 }
   0xb   :  { %1271 = vmatprep.mubr.msk.f32.mxu0 %vm41_vm0, %v26_v58 }
   0xc   :  { %1289 = vmatmul.mubr.msk.f32.vlgmr.msra.gmra.mrb[0].mxu1 %vm21_vm2, %v180_v13  ;;  %1272 = vmatmul.mubr.msk.f32.gmra.mrb[2].mxu0 %vm41_vm0, %v27_v59 }
   0xd   :  { %1380 = vmatpush3.bf16.msra.mxu1 %v1543_v8  ;;  %1299 = vmatprep.mubr.msk.f32.mxu1 %vm1491_vm1, %v1492_v4 }
   0xe   :  { %1381 = vmatprep.subr.bf16.mxu1 %v1490_v0  ;;  %1389 = vmatpush3.bf16.msra.mxu0 %v1556_v12 }
   0xf   :  { %1396 = vmatprep.subr.bf16.mxu0 %v1490_v0  ;;  %1274 = vmatprep.mubr.msk.f32.mxu0 %vm41_vm0, %v28_v60 }
  0x10   :  { %1275 = vmatmul.mubr.msk.f32.gmra.mrb[4].mxu0 %vm41_vm0, %v29_v61 }
  0x11   :  { %1383 = vmatpush3.bf16.msra.mxu1 %v1556_v12  ;;  %1277 = vmatprep.mubr.msk.f32.mxu0 %vm41_vm0, %v30_v62 }
  0x12   :  { %1390 = vmatprep.subr.bf16.mxu1 %v1490_v0 }
  0x14   :  { %1278 = vmatmul.mubr.msk.f32.gmra.mrb[6].mxu0 %vm41_vm0, %v31_v63 }
  0x15   :  { %1310 = vmatprep.mubr.msk.f32.mxu0 %vm1491_vm1, %v1492_v4 }
  0xdb   :  { %v1270_v15 = vpop.f32.mrb[0].mxu0 }
  0xdc   :  { %v132_v16 = vpop.f32.mrb[1].mxu0  ;;  %v138_v42 = vadd.f32 %v1270_v15, %v1577_v14 }
  0xdd   :  { %v133_v17 = vadd.f32 %v1577_v14, %v132_v16 }
  0xdf   :  { %v255_v18 = vpop.f32.mrb[0].mxu1  ;;  %v1641_v6 = vpop.f32.mrb[2].mxu0 }
  0xe0   :  { %v259_v19 = vadd.f32 %v255_v18, %v133_v17  ;;  %v1290_v20 = vpop.f32.mrb[1].mxu1  ;;  %v142_v7 = vpop.f32.mrb[3].mxu0 }
  0xe2   :  { %1426 = vtanh.f32 %v259_v19  ;;  %v1192_v23 = vmul.f32 -1.442695, %v259_v19  ;;  %v143_v19 = vadd.f32 %v1577_v14, %v142_v7 }
  0xe3   :  { %v1643_v9 = vpop.f32.mrb[4].mxu0 }
  0xe4   :  { %1428 = vpow2.f32 %v1192_v23  ;;  %v1645_v10 = vpop.f32.mrb[5].mxu0 }
  0xe7   :  { %v1666_v17 = vpop.f32.mrb[6].mxu0 }
  0xe8   :  { %v1668_v18 = vpop.f32.mrb[7].mxu0 }
  0xec   :  { %v1427_v21 = vpop.eup %1426 }
  0xed   :  { %274 = vrot.lane.b32.xlu0 %v1427_v21, %s1493_s5 }
  0xee   :  { %v1429_v24 = vpop.eup %1428 }
  0xef   :  { %v263_v25 = vadd.f32 1.0, %v1429_v24 }
  0xf1   :  { %269 = vrot.lane.b32.xlu0 %v267_v22, %s1494_s6  ;;  %1430 = vrcp.f32 %v263_v25 }
  0xfb   :  { %v1431_v26 = vpop.eup %1430 }
 0x15f   :  { %v275_v27 = vpop.permute.xlu0 %274 }
 0x160   :  { %v277_v28 = vmul.f32 %v1431_v26, %v275_v27 }
 0x162   :  { %279 = vrot.lane.b32.xlu1 %v277_v28, %s1494_s6 }
 0x163   :  { %v270_v29 = vpop.permute.xlu0 %269 }
 0x164   :  { %v272_v30 = vmul.f32 %v1431_v26, %v270_v29 }
 0x1d4   :  { %v280_v31 = vpop.permute.xlu1 %279 }
 0x1d5   :  { %v282_v32 = vadd.f32 %v280_v31, %v272_v30 }
 0x1d7   :  { %1432 = vtanh.f32 %v282_v32 }
 0x1e1   :  { %v1433_v33 = vpop.eup %1432 }
 0x1e2   :  { %285 = vrot.lane.b32.xlu1 %v1433_v33, %s1493_s5 }
 0x1e6   :  { %290 = vrot.lane.b32.xlu1 %v282_v32, %s1495_s3 }
 0x254   :  { %v286_v34 = vpop.permute.xlu1 %285 }
 0x255   :  { %v288_v35 = vmul.f32 %v1431_v26, %v286_v34 }
 0x257   :  { %295 = vrot.lane.b32.xlu0 %v288_v35, %s1494_s6 }
 0x258   :  { %v291_v36 = vpop.permute.xlu1 %290 }
 0x259   :  { %293 = vst.msk [vmem:[#allocation4] sm:$0xff] %vm21_vm2, %v291_v36 }
 0x260   :  { %v388_v37 = vld [vmem:[#allocation4] sm:$0xff] }
 0x261   :  { %390 = vrot.lane.b32.xlu1 %v388_v37, %s1494_s6 }
 0x2c9   :  { %v296_v38 = vpop.permute.xlu0 %295 }
 0x2ca   :  { %298 = vst.msk [vmem:[#allocation3] sm:$0xff] %vm21_vm2, %v296_v38  ;;  %299 = vst.msk [vmem:[%s1819_s4] sm:$0xff] %vm21_vm2, %v296_v38 }
 0x2d1   :  { %v1154_v39 = vld [vmem:[%s1819_s4] sm:$0xff] }
 0x2d2   :  { %v302_v40 = vld [vmem:[#allocation3] sm:$0xff]  ;;  %v1162_v41 = vmax.f32 %v1154_v39, 0.0 }
 0x2d3   :  { %1300 = vmatmul.mubr.msk.f32.vlgmr.msra.gmra.mrb[2].mxu1 %vm21_vm2, %v302_v40  ;;  %v391_v53 = vpop.permute.xlu1 %390 }
 0x2d4   :  { %1392 = vmatpush3.bf16.msra.mxu1 %v1543_v8  ;;  %1321 = vmatprep.mubr.msk.f32.mxu1 %vm1491_vm1, %v1492_v4  ;;  %1170 = vst.msk [vmem:[%s1819_s4] sm:$0xff] %vm21_vm2, %v1162_v41 }
 0x2d5   :  { %1393 = vmatprep.subr.bf16.mxu1 %v1490_v0 }
 0x2d8   :  { %1395 = vmatpush3.bf16.msra.mxu1 %v1556_v12 }
 0x2d9   :  { %1402 = vmatprep.subr.bf16.mxu1 %v1490_v0 }
 0x3a6   :  { %v376_v43 = vpop.f32.mrb[2].mxu1 }
 0x3a7   :  { %v380_v44 = vadd.f32 %v376_v43, %v138_v42  ;;  %v1301_v45 = vpop.f32.mrb[3].mxu1  ;;  %v148_v43 = vadd.f32 %v1641_v6, %v1577_v14 }
 0x3a9   :  { %1434 = vtanh.f32 %v380_v44  ;;  %v1194_v47 = vmul.f32 -1.442695, %v380_v44 }
 0x3ab   :  { %1436 = vpow2.f32 %v1194_v47 }
 0x3b3   :  { %v1435_v46 = vpop.eup %1434 }
 0x3b4   :  { %395 = vrot.lane.b32.xlu0 %v1435_v46, %s1493_s5 }
 0x3b5   :  { %v1437_v48 = vpop.eup %1436 }
 0x3b6   :  { %v384_v49 = vadd.f32 1.0, %v1437_v48 }
 0x3b8   :  { %1438 = vrcp.f32 %v384_v49 }
 0x3c2   :  { %v1439_v50 = vpop.eup %1438 }
 0x3c3   :  { %v393_v54 = vmul.f32 %v1439_v50, %v391_v53 }
 0x426   :  { %v396_v51 = vpop.permute.xlu0 %395 }
 0x427   :  { %v398_v52 = vmul.f32 %v1439_v50, %v396_v51 }
 0x429   :  { %400 = vrot.lane.b32.xlu0 %v398_v52, %s1494_s6 }
 0x49b   :  { %v401_v55 = vpop.permute.xlu0 %400 }
 0x49c   :  { %v403_v56 = vadd.f32 %v401_v55, %v393_v54 }
 0x49e   :  { %1440 = vtanh.f32 %v403_v56 }
 0x4a8   :  { %v1441_v57 = vpop.eup %1440 }
 0x4a9   :  { %406 = vrot.lane.b32.xlu1 %v1441_v57, %s1493_s5 }
 0x4ad   :  { %411 = vrot.lane.b32.xlu1 %v403_v56, %s1495_s3 }
 0x51b   :  { %v407_v1 = vpop.permute.xlu1 %406 }
 0x51c   :  { %v409_v2 = vmul.f32 %v1439_v50, %v407_v1 }
 0x51e   :  { %416 = vrot.lane.b32.xlu0 %v409_v2, %s1494_s6 }
 0x51f   :  { %v412_v3 = vpop.permute.xlu1 %411 }
 0x520   :  { %414 = vst.msk [vmem:[#allocation4] sm:$0xff] %vm21_vm2, %v412_v3 }
 0x527   :  { %v510_v5 = vld [vmem:[#allocation4] sm:$0xff] }
 0x528   :  { %512 = vrot.lane.b32.xlu1 %v510_v5, %s1494_s6  ;;  %v153_v5 = vadd.f32 %v1577_v14, %v1645_v10 }
 0x590   :  { %v417_v11 = vpop.permute.xlu0 %416 }
 0x591   :  { %419 = vst.msk [vmem:[#allocation3] sm:$0xff] %vm21_vm2, %v417_v11  ;;  %1195 = vst.msk [vmem:[%s1819_s4 + $0x8] sm:$0xff] %vm21_vm2, %v417_v11 }
 0x598   :  { %v1155_v13 = vld [vmem:[%s1819_s4 + $0x8] sm:$0xff]  ;;  %v424_v15 = vld [vmem:[#allocation3] sm:$0xff] }
 0x599   :  { %v1163_v16 = vmax.f32 %v1155_v13, 0.0  ;;  %1311 = vmatmul.mubr.msk.f32.vlgmr.msra.gmra.mrb[8].mxu0 %vm21_vm2, %v424_v15 }
 0x59a   :  { %1398 = vmatpush3.bf16.msra.mxu0 %v1543_v8  ;;  %1332 = vmatprep.mubr.msk.f32.mxu0 %vm1491_vm1, %v1492_v4  ;;  %v513_v30 = vpop.permute.xlu1 %512 }
 0x59b   :  { %1171 = vst.msk [vmem:[%s1819_s4 + $0x8] sm:$0xff] %vm21_vm2, %v1163_v16  ;;  %1399 = vmatprep.subr.bf16.mxu0 %v1490_v0 }
 0x59e   :  { %1401 = vmatpush3.bf16.msra.mxu0 %v1556_v12 }
 0x59f   :  { %1408 = vmatprep.subr.bf16.mxu0 %v1490_v0 }
 0x66c   :  { %v498_v20 = vpop.f32.mrb[8].mxu0 }
 0x66d   :  { %v502_v21 = vadd.f32 %v498_v20, %v143_v19  ;;  %v1312_v22 = vpop.f32.mrb[9].mxu0 }
 0x66f   :  { %1442 = vtanh.f32 %v502_v21  ;;  %v1197_v24 = vmul.f32 -1.442695, %v502_v21 }
 0x671   :  { %1444 = vpow2.f32 %v1197_v24 }
 0x679   :  { %v1443_v23 = vpop.eup %1442 }
 0x67a   :  { %517 = vrot.lane.b32.xlu0 %v1443_v23, %s1493_s5 }
 0x67b   :  { %v1445_v25 = vpop.eup %1444 }
 0x67c   :  { %v506_v26 = vadd.f32 1.0, %v1445_v25 }
 0x67e   :  { %1446 = vrcp.f32 %v506_v26 }
 0x688   :  { %v1447_v27 = vpop.eup %1446 }
 0x689   :  { %v515_v31 = vmul.f32 %v1447_v27, %v513_v30 }
 0x6ec   :  { %v518_v28 = vpop.permute.xlu0 %517 }
 0x6ed   :  { %v520_v29 = vmul.f32 %v1447_v27, %v518_v28 }
 0x6ef   :  { %522 = vrot.lane.b32.xlu0 %v520_v29, %s1494_s6 }
 0x761   :  { %v523_v32 = vpop.permute.xlu0 %522 }
 0x762   :  { %v525_v33 = vadd.f32 %v523_v32, %v515_v31 }
 0x764   :  { %1448 = vtanh.f32 %v525_v33 }
 0x76e   :  { %v1449_v34 = vpop.eup %1448 }
 0x76f   :  { %528 = vrot.lane.b32.xlu1 %v1449_v34, %s1493_s5 }
 0x773   :  { %533 = vrot.lane.b32.xlu1 %v525_v33, %s1495_s3 }
 0x7e1   :  { %v529_v35 = vpop.permute.xlu1 %528 }
 0x7e2   :  { %v531_v36 = vmul.f32 %v1447_v27, %v529_v35  ;;  %v158_v35 = vadd.f32 %v1643_v9, %v1577_v14 }
 0x7e4   :  { %538 = vrot.lane.b32.xlu0 %v531_v36, %s1494_s6 }
 0x7e5   :  { %v534_v37 = vpop.permute.xlu1 %533 }
 0x7e6   :  { %536 = vst.msk [vmem:[#allocation4] sm:$0xff] %vm21_vm2, %v534_v37 }
 0x7ed   :  { %v632_v38 = vld [vmem:[#allocation4] sm:$0xff] }
 0x7ee   :  { %634 = vrot.lane.b32.xlu1 %v632_v38, %s1494_s6 }
 0x856   :  { %v539_v39 = vpop.permute.xlu0 %538 }
 0x857   :  { %541 = vst.msk [vmem:[#allocation3] sm:$0xff] %vm21_vm2, %v539_v39  ;;  %1198 = vst.msk [vmem:[%s1819_s4 + $0x10] sm:$0xff] %vm21_vm2, %v539_v39 }
 0x85e   :  { %v1156_v40 = vld [vmem:[%s1819_s4 + $0x10] sm:$0xff]  ;;  %v546_v41 = vld [vmem:[#allocation3] sm:$0xff] }
 0x85f   :  { %v1164_v42 = vmax.f32 %v1156_v40, 0.0  ;;  %1322 = vmatmul.mubr.msk.f32.vlgmr.msra.gmra.mrb[4].mxu1 %vm21_vm2, %v546_v41 }
 0x860   :  { %1404 = vmatpush3.bf16.msra.mxu1 %v1543_v8  ;;  %1343 = vmatprep.mubr.msk.f32.mxu1 %vm1491_vm1, %v1492_v4  ;;  %v635_v54 = vpop.permute.xlu1 %634 }
 0x861   :  { %1172 = vst.msk [vmem:[%s1819_s4 + $0x10] sm:$0xff] %vm21_vm2, %v1164_v42  ;;  %1405 = vmatprep.subr.bf16.mxu1 %v1490_v0 }
 0x864   :  { %1407 = vmatpush3.bf16.msra.mxu1 %v1556_v12 }
 0x865   :  { %1414 = vmatprep.subr.bf16.mxu1 %v1490_v0 }
 0x932   :  { %v620_v44 = vpop.f32.mrb[4].mxu1 }
 0x933   :  { %v624_v45 = vadd.f32 %v620_v44, %v148_v43  ;;  %v1323_v46 = vpop.f32.mrb[5].mxu1 }
 0x935   :  { %1450 = vtanh.f32 %v624_v45  ;;  %v1200_v48 = vmul.f32 -1.442695, %v624_v45 }
 0x937   :  { %1452 = vpow2.f32 %v1200_v48 }
 0x93f   :  { %v1451_v47 = vpop.eup %1450 }
 0x940   :  { %639 = vrot.lane.b32.xlu0 %v1451_v47, %s1493_s5 }
 0x941   :  { %v1453_v49 = vpop.eup %1452 }
 0x942   :  { %v628_v50 = vadd.f32 1.0, %v1453_v49 }
 0x944   :  { %1454 = vrcp.f32 %v628_v50 }
 0x94e   :  { %v1455_v51 = vpop.eup %1454 }
 0x94f   :  { %v637_v55 = vmul.f32 %v1455_v51, %v635_v54  ;;  %v163_v54 = vadd.f32 %v1577_v14, %v1668_v18 }
 0x9b2   :  { %v640_v52 = vpop.permute.xlu0 %639 }
 0x9b3   :  { %v642_v53 = vmul.f32 %v1455_v51, %v640_v52 }
 0x9b5   :  { %644 = vrot.lane.b32.xlu0 %v642_v53, %s1494_s6 }
 0xa27   :  { %v645_v56 = vpop.permute.xlu0 %644 }
 0xa28   :  { %v647_v57 = vadd.f32 %v645_v56, %v637_v55 }
 0xa2a   :  { %1456 = vtanh.f32 %v647_v57 }
 0xa34   :  { %v1457_v58 = vpop.eup %1456 }
 0xa35   :  { %650 = vrot.lane.b32.xlu1 %v1457_v58, %s1493_s5 }
 0xa39   :  { %655 = vrot.lane.b32.xlu1 %v647_v57, %s1495_s3 }
 0xaa7   :  { %v651_v59 = vpop.permute.xlu1 %650 }
 0xaa8   :  { %v653_v60 = vmul.f32 %v1455_v51, %v651_v59 }
 0xaaa   :  { %660 = vrot.lane.b32.xlu0 %v653_v60, %s1494_s6 }
 0xaab   :  { %v656_v61 = vpop.permute.xlu1 %655 }
 0xaac   :  { %658 = vst.msk [vmem:[#allocation4] sm:$0xff] %vm21_vm2, %v656_v61 }
 0xab3   :  { %v754_v62 = vld [vmem:[#allocation4] sm:$0xff] }
 0xab4   :  { %756 = vrot.lane.b32.xlu1 %v754_v62, %s1494_s6 }
 0xb1c   :  { %v661_v63 = vpop.permute.xlu0 %660 }
 0xb1d   :  { %663 = vst.msk [vmem:[#allocation3] sm:$0xff] %vm21_vm2, %v661_v63  ;;  %1201 = vst.msk [vmem:[%s1819_s4 + $0x18] sm:$0xff] %vm21_vm2, %v661_v63 }
 0xb24   :  { %v1157_v1 = vld [vmem:[%s1819_s4 + $0x18] sm:$0xff]  ;;  %v668_v2 = vld [vmem:[#allocation3] sm:$0xff] }
 0xb25   :  { %v1165_v3 = vmax.f32 %v1157_v1, 0.0  ;;  %1333 = vmatmul.mubr.msk.f32.vlgmr.msra.gmra.mrb[10].mxu0 %vm21_vm2, %v668_v2 }
 0xb26   :  { %1410 = vmatpush3.bf16.msra.mxu0 %v1543_v8  ;;  %1354 = vmatprep.mubr.msk.f32.mxu0 %vm1491_vm1, %v1492_v4  ;;  %v757_v23 = vpop.permute.xlu1 %756 }
 0xb27   :  { %1173 = vst.msk [vmem:[%s1819_s4 + $0x18] sm:$0xff] %vm21_vm2, %v1165_v3  ;;  %1411 = vmatprep.subr.bf16.mxu0 %v1490_v0 }
 0xb2a   :  { %1413 = vmatpush3.bf16.msra.mxu0 %v1556_v12 }
 0xbf8   :  { %v742_v6 = vpop.f32.mrb[10].mxu0 }
 0xbf9   :  { %v746_v7 = vadd.f32 %v742_v6, %v153_v5  ;;  %v1334_v11 = vpop.f32.mrb[11].mxu0 }
 0xbfb   :  { %1458 = vtanh.f32 %v746_v7  ;;  %v1203_v15 = vmul.f32 -1.442695, %v746_v7 }
 0xbfd   :  { %1460 = vpow2.f32 %v1203_v15 }
 0xc05   :  { %v1459_v13 = vpop.eup %1458 }
 0xc06   :  { %761 = vrot.lane.b32.xlu0 %v1459_v13, %s1493_s5 }
 0xc07   :  { %v1461_v16 = vpop.eup %1460 }
 0xc08   :  { %v750_v19 = vadd.f32 1.0, %v1461_v16 }
 0xc0a   :  { %1462 = vrcp.f32 %v750_v19 }
 0xc14   :  { %v1463_v20 = vpop.eup %1462 }
 0xc15   :  { %v759_v24 = vmul.f32 %v1463_v20, %v757_v23 }
 0xc78   :  { %v762_v21 = vpop.permute.xlu0 %761 }
 0xc79   :  { %v764_v22 = vmul.f32 %v1463_v20, %v762_v21 }
 0xc7b   :  { %766 = vrot.lane.b32.xlu0 %v764_v22, %s1494_s6  ;;  %v168_v22 = vadd.f32 %v1666_v17, %v1577_v14 }
 0xced   :  { %v767_v10 = vpop.permute.xlu0 %766 }
 0xcee   :  { %v769_v25 = vadd.f32 %v767_v10, %v759_v24 }
 0xcf0   :  { %1464 = vtanh.f32 %v769_v25 }
 0xcfa   :  { %v1465_v26 = vpop.eup %1464 }
 0xcfb   :  { %772 = vrot.lane.b32.xlu1 %v1465_v26, %s1493_s5 }
 0xcff   :  { %777 = vrot.lane.b32.xlu1 %v769_v25, %s1495_s3 }
 0xd6d   :  { %v773_v27 = vpop.permute.xlu1 %772 }
 0xd6e   :  { %v775_v28 = vmul.f32 %v1463_v20, %v773_v27 }
 0xd70   :  { %782 = vrot.lane.b32.xlu0 %v775_v28, %s1494_s6 }
 0xd71   :  { %v778_v29 = vpop.permute.xlu1 %777 }
 0xd72   :  { %780 = vst.msk [vmem:[#allocation4] sm:$0xff] %vm21_vm2, %v778_v29 }
 0xd79   :  { %v876_v30 = vld [vmem:[#allocation4] sm:$0xff] }
 0xd7a   :  { %878 = vrot.lane.b32.xlu1 %v876_v30, %s1494_s6 }
 0xde2   :  { %v783_v31 = vpop.permute.xlu0 %782 }
 0xde3   :  { %785 = vst.msk [vmem:[#allocation3] sm:$0xff] %vm21_vm2, %v783_v31  ;;  %1204 = vst.msk [vmem:[%s1819_s4 + $0x20] sm:$0xff] %vm21_vm2, %v783_v31 }
 0xdea   :  { %v1158_v32 = vld [vmem:[%s1819_s4 + $0x20] sm:$0xff] }
 0xdeb   :  { %v790_v33 = vld [vmem:[#allocation3] sm:$0xff]  ;;  %v1166_v34 = vmax.f32 %v1158_v32, 0.0 }
 0xdec   :  { %1344 = vmatmul.mubr.msk.f32.vlgmr.msra.gmra.mrb[6].mxu1 %vm21_vm2, %v790_v33 }
 0xded   :  { %1416 = vmatpush3.bf16.msra.mxu1 %v1543_v8  ;;  %1365 = vmatprep.mubr.msk.f32.mxu1 %vm1491_vm1, %v1492_v4  ;;  %1174 = vst.msk [vmem:[%s1819_s4 + $0x20] sm:$0xff] %vm21_vm2, %v1166_v34 }
 0xdee   :  { %1417 = vmatprep.subr.bf16.mxu1 %v1490_v0 }
 0xdf1   :  { %1419 = vmatpush3.bf16.msra.mxu1 %v1556_v12  ;;  %v879_v12 = vpop.permute.xlu1 %878 }
 0xebf   :  { %v864_v36 = vpop.f32.mrb[6].mxu1 }
 0xec0   :  { %v868_v37 = vadd.f32 %v864_v36, %v158_v35  ;;  %v1345_v38 = vpop.f32.mrb[7].mxu1 }
 0xec2   :  { %1466 = vtanh.f32 %v868_v37  ;;  %v1206_v4 = vmul.f32 -1.442695, %v868_v37 }
 0xec4   :  { %1468 = vpow2.f32 %v1206_v4 }
 0xecc   :  { %v1467_v8 = vpop.eup %1466 }
 0xecd   :  { %883 = vrot.lane.b32.xlu0 %v1467_v8, %s1493_s5 }
 0xece   :  { %v1469_v39 = vpop.eup %1468 }
 0xecf   :  { %v872_v40 = vadd.f32 1.0, %v1469_v39 }
 0xed1   :  { %1470 = vrcp.f32 %v872_v40 }
 0xedb   :  { %v1471_v41 = vpop.eup %1470 }
 0xedc   :  { %v881_v43 = vmul.f32 %v1471_v41, %v879_v12 }
 0xf3f   :  { %v884_v42 = vpop.permute.xlu0 %883 }
 0xf40   :  { %v886_v0 = vmul.f32 %v1471_v41, %v884_v42 }
 0xf42   :  { %888 = vrot.lane.b32.xlu0 %v886_v0, %s1494_s6 }
 0xfb4   :  { %v889_v9 = vpop.permute.xlu0 %888 }
 0xfb5   :  { %v891_v44 = vadd.f32 %v889_v9, %v881_v43 }
 0xfb7   :  { %1472 = vtanh.f32 %v891_v44 }
 0xfc1   :  { %v1473_v45 = vpop.eup %1472 }
 0xfc2   :  { %894 = vrot.lane.b32.xlu1 %v1473_v45, %s1493_s5 }
 0xfc6   :  { %899 = vrot.lane.b32.xlu1 %v891_v44, %s1495_s3 }
0x1034   :  { %v895_v46 = vpop.permute.xlu1 %894 }
0x1035   :  { %v897_v47 = vmul.f32 %v1471_v41, %v895_v46 }
0x1037   :  { %904 = vrot.lane.b32.xlu0 %v897_v47, %s1494_s6 }
0x1038   :  { %v900_v48 = vpop.permute.xlu1 %899 }
0x1039   :  { %902 = vst.msk [vmem:[#allocation4] sm:$0xff] %vm21_vm2, %v900_v48 }
0x1040   :  { %v998_v49 = vld [vmem:[#allocation4] sm:$0xff] }
0x1041   :  { %1000 = vrot.lane.b32.xlu1 %v998_v49, %s1494_s6 }
0x10a9   :  { %v905_v50 = vpop.permute.xlu0 %904 }
0x10aa   :  { %907 = vst.msk [vmem:[#allocation3] sm:$0xff] %vm21_vm2, %v905_v50  ;;  %1207 = vst.msk [vmem:[%s1819_s4 + $0x28] sm:$0xff] %vm21_vm2, %v905_v50 }
0x10b1   :  { %v1159_v51 = vld [vmem:[%s1819_s4 + $0x28] sm:$0xff]  ;;  %v912_v52 = vld [vmem:[#allocation3] sm:$0xff] }
0x10b2   :  { %v1167_v53 = vmax.f32 %v1159_v51, 0.0  ;;  %1355 = vmatmul.mubr.msk.f32.vlgmr.msra.gmra.mrb[12].mxu0 %vm21_vm2, %v912_v52 }
0x10b3   :  { %v1001_v2 = vpop.permute.xlu1 %1000 }
0x10b4   :  { %1175 = vst.msk [vmem:[%s1819_s4 + $0x28] sm:$0xff] %vm21_vm2, %v1167_v53 }
0x1185   :  { %v986_v55 = vpop.f32.mrb[12].mxu0 }
0x1186   :  { %v990_v56 = vadd.f32 %v986_v55, %v163_v54  ;;  %v1356_v57 = vpop.f32.mrb[13].mxu0 }
0x1188   :  { %1474 = vtanh.f32 %v990_v56  ;;  %v1209_v59 = vmul.f32 -1.442695, %v990_v56 }
0x118a   :  { %1476 = vpow2.f32 %v1209_v59 }
0x1192   :  { %v1475_v58 = vpop.eup %1474 }
0x1193   :  { %1005 = vrot.lane.b32.xlu0 %v1475_v58, %s1493_s5 }
0x1194   :  { %v1477_v60 = vpop.eup %1476 }
0x1195   :  { %v994_v61 = vadd.f32 1.0, %v1477_v60 }
0x1197   :  { %1478 = vrcp.f32 %v994_v61 }
0x11a1   :  { %v1479_v62 = vpop.eup %1478 }
0x11a2   :  { %v1003_v3 = vmul.f32 %v1479_v62, %v1001_v2 }
0x1205   :  { %v1006_v63 = vpop.permute.xlu0 %1005 }
0x1206   :  { %v1008_v1 = vmul.f32 %v1479_v62, %v1006_v63 }
0x1208   :  { %1010 = vrot.lane.b32.xlu0 %v1008_v1, %s1494_s6 }
0x127a   :  { %v1011_v18 = vpop.permute.xlu0 %1010 }
0x127b   :  { %v1013_v5 = vadd.f32 %v1011_v18, %v1003_v3 }
0x127d   :  { %1480 = vtanh.f32 %v1013_v5 }
0x1287   :  { %v1481_v6 = vpop.eup %1480 }
0x1288   :  { %1016 = vrot.lane.b32.xlu1 %v1481_v6, %s1493_s5 }
0x128c   :  { %1021 = vrot.lane.b32.xlu1 %v1013_v5, %s1495_s3 }
0x12fa   :  { %v1017_v7 = vpop.permute.xlu1 %1016 }
0x12fb   :  { %v1019_v11 = vmul.f32 %v1479_v62, %v1017_v7 }
0x12fd   :  { %1026 = vrot.lane.b32.xlu0 %v1019_v11, %s1494_s6 }
0x12fe   :  { %v1022_v13 = vpop.permute.xlu1 %1021 }
0x12ff   :  { %1024 = vst.msk [vmem:[#allocation4] sm:$0xff] %vm21_vm2, %v1022_v13 }
0x1306   :  { %v1120_v15 = vld [vmem:[#allocation4] sm:$0xff] }
0x1307   :  { %1122 = vrot.lane.b32.xlu1 %v1120_v15, %s1494_s6 }
0x136f   :  { %v1027_v16 = vpop.permute.xlu0 %1026 }
0x1370   :  { %1029 = vst.msk [vmem:[#allocation3] sm:$0xff] %vm21_vm2, %v1027_v16  ;;  %1210 = vst.msk [vmem:[%s1819_s4 + $0x30] sm:$0xff] %vm21_vm2, %v1027_v16 }
0x1377   :  { %v1160_v19 = vld [vmem:[%s1819_s4 + $0x30] sm:$0xff]  ;;  %v1034_v20 = vld [vmem:[#allocation3] sm:$0xff] }
0x1378   :  { %v1168_v21 = vmax.f32 %v1160_v19, 0.0  ;;  %1366 = vmatmul.mubr.msk.f32.vlgmr.msra.gmra.mrb[8].mxu1 %vm21_vm2, %v1034_v20 }
0x1379   :  { %v1123_v32 = vpop.permute.xlu1 %1122 }
0x137a   :  { %1176 = vst.msk [vmem:[%s1819_s4 + $0x30] sm:$0xff] %vm21_vm2, %v1168_v21 }
0x144b   :  { %v1108_v23 = vpop.f32.mrb[8].mxu1 }
0x144c   :  { %v1112_v24 = vadd.f32 %v1108_v23, %v168_v22  ;;  %v1367_v10 = vpop.f32.mrb[9].mxu1 }
0x144e   :  { %1482 = vtanh.f32 %v1112_v24  ;;  %v1212_v26 = vmul.f32 -1.442695, %v1112_v24 }
0x1450   :  { %1484 = vpow2.f32 %v1212_v26 }
0x1458   :  { %v1483_v25 = vpop.eup %1482 }
0x1459   :  { %1127 = vrot.lane.b32.xlu0 %v1483_v25, %s1493_s5 }
0x145a   :  { %v1485_v27 = vpop.eup %1484 }
0x145b   :  { %v1116_v28 = vadd.f32 1.0, %v1485_v27 }
0x145d   :  { %1486 = vrcp.f32 %v1116_v28 }
0x1467   :  { %v1487_v29 = vpop.eup %1486 }
0x1468   :  { %v1125_v33 = vmul.f32 %v1487_v29, %v1123_v32 }
0x14cb   :  { %v1128_v30 = vpop.permute.xlu0 %1127 }
0x14cc   :  { %v1130_v31 = vmul.f32 %v1487_v29, %v1128_v30 }
0x14ce   :  { %1132 = vrot.lane.b32.xlu0 %v1130_v31, %s1494_s6 }
0x1540   :  { %v1133_v14 = vpop.permute.xlu0 %1132 }
0x1541   :  { %v1135_v17 = vadd.f32 %v1133_v14, %v1125_v33 }
0x1543   :  { %1488 = vtanh.f32 %v1135_v17 }
0x154d   :  { %v1489_v34 = vpop.eup %1488 }
0x154e   :  { %1138 = vrot.lane.b32.xlu1 %v1489_v34, %s1493_s5 }
0x1552   :  { %1143 = vrot.lane.b32.xlu1 %v1135_v17, %s1495_s3 }
0x15c0   :  { %v1139_v35 = vpop.permute.xlu1 %1138 }
0x15c1   :  { %v1141_v36 = vmul.f32 %v1487_v29, %v1139_v35 }
0x15c3   :  { %1148 = vrot.lane.b32.xlu0 %v1141_v36, %s1494_s6 }
0x15c4   :  { %v1144_v37 = vpop.permute.xlu1 %1143 }
0x15c5   :  { %1146 = vst.msk [vmem:[#allocation4] sm:$0xff] %vm21_vm2, %v1144_v37 }
0x1635   :  { %v1149_v38 = vpop.permute.xlu0 %1148 }
0x1636   :  { %1151 = vst.msk [vmem:[#allocation3] sm:$0xff] %vm21_vm2, %v1149_v38  ;;  %1213 = vst.msk [vmem:[%s1819_s4 + $0x38] sm:$0xff] %vm21_vm2, %v1149_v38 }
0x163d   :  { %v1161_v8 = vld [vmem:[%s1819_s4 + $0x38] sm:$0xff] }
0x163e   :  { %v1169_v4 = vmax.f32 %v1161_v8, 0.0 }
0x1640   :  { %1177 = vst.msk [vmem:[%s1819_s4 + $0x38] sm:$0xff] %vm21_vm2, %v1169_v4 }

// kernel: lstmae_forward.3
= control target key start
LH: loop header
LB: loop body
LE: loop exit
PB: predicated region body
PF: predicated region fallthrough
CT: control target
= control target key end

     0   :  { %vm43_vm0 = vcmask 261120   ;;  %v1497_v3 = vmov 0.0|0.0   ;;  %vm1498_vm1 = vmmov 0   ;;  %v1499_v4 = vmov 0.0   ;;  %s1500_s5 = smov 96   ;;  %s1502_s6 = smov 32   ;;  %s1799_s1 = inlined_call_operand.vmem [shape: f32[32,64], index: 1, kind: input, shape index: {}]   ;;  %s1800_s0 = inlined_call_operand.vmem [shape: f32[8,8,32], index: 0, kind: input, shape index: {}]   ;;  %s1801_s2 = inlined_call_operand.vmem [shape: f32[16,64], index: 2, kind: input, shape index: {}]   ;;  %s1802_s3 = inlined_call_operand.vmem [shape: f32[1,64], index: 3, kind: input, shape index: {}]   ;;  %s1803_s4 = inlined_call_operand.vmem [shape: f32[8,8,16], index: 4, kind: output, shape index: {}]  }
   0x1   :  { %v32_v0 = vld [vmem:[%s1799_s1] sm:$0xff]  ;;  %v33_v1 = vld [vmem:[%s1799_s1 + $0x8] sm:$0xff]  ;;  %v34_v2 = vld [vmem:[%s1799_s1 + $0x10] sm:$0xff]  ;;  %1369 = vmatprep.subr.bf16.mxu1 %v1497_v3  ;;  %1309 = vmatprep.mubr.msk.f32.mxu1 %vm1498_vm1, %v1499_v4  ;;  %vm21_vm2 = vcmask 130048   ;;  %vm173_vm3 = vcmask 523264   ;;  %s1503_s7 = smov 112  }
   0x2   :  { %v1361_v5 = vpack.c.bf16 %v33_v1, %v32_v0  ;;  %v35_v6 = vld [vmem:[%s1799_s1 + $0x18] sm:$0xff]  ;;  %v24_v7 = vld [vmem:[%s1800_s0] sm:$0xff]  ;;  %22 = vst.msk [vmem:[#allocation3] sm:$0xff] %vm21_vm2, %v1499_v4  ;;  %23 = vst.msk [vmem:[#allocation4] sm:$0xff] %vm21_vm2, %v1499_v4  ;;  %s1504_s8 = smov 80  }
   0x3   :  { %v1365_v8 = vpack.c.bf16 %v35_v6, %v34_v2  ;;  %1293 = vmatprep.mubr.msk.f32.mxu0 %vm43_vm0, %v24_v7  ;;  %v184_v9 = vld [vmem:[%s1801_s2] sm:$0xff]  ;;  %v185_v10 = vld [vmem:[%s1801_s2 + $0x8] sm:$0xff]  ;;  %v26_v63 = vld [vmem:[%s1800_s0 + $0x10] sm:$0xff] }
   0x4   :  { %1362 = vmatprep.subr.bf16.mxu0 %v1361_v5  ;;  %v1559_v11 = vpack.c.bf16 %v185_v10, %v184_v9  ;;  %v25_v12 = vld [vmem:[%s1800_s0 + $0x8] sm:$0xff]  ;;  %v1578_v14 = vld [vmem:[%s1802_s3] ss:$0 sm:$0xff]  ;;  %s1501_s3 = smov 16   ;;  %v27_v0 = vld [vmem:[%s1800_s0 + $0x18] sm:$0xff] }
   0x5   :  { %1364 = vmatpush3.bf16.msra.mxu0 %v1361_v5 }
   0x6   :  { %1366 = vmatprep.subr.bf16.mxu0 %v1365_v8  ;;  %1371 = vmatpush3.bf16.msra.mxu1 %v1559_v11 }
   0x7   :  { %1372 = vmatprep.subr.bf16.mxu1 %v1497_v3 }
   0x9   :  { %1368 = vmatpush3.bf16.msra.mxu0 %v1365_v8  ;;  %v183_v13 = vld [vmem:[#allocation3] sm:$0xff]  ;;  %v268_v24 = vld [vmem:[#allocation4] sm:$0xff] }
   0xa   :  { %1310 = vmatmul.mubr.msk.f32.vlgmr.msra.gmra.mrb[0].mxu1 %vm21_vm2, %v183_v13  ;;  %1384 = vmatprep.subr.bf16.mxu0 %v1497_v3 }
   0xb   :  { %1374 = vmatpush3.bf16.msra.mxu1 %v1559_v11  ;;  %1316 = vmatprep.mubr.msk.f32.mxu1 %vm1498_vm1, %v1499_v4 }
   0xc   :  { %1294 = vmatmul.mubr.msk.f32.vlgmr.msra.gmra.mrb[0].mxu0 %vm43_vm0, %v25_v12  ;;  %1375 = vmatprep.subr.bf16.mxu1 %v1497_v3 }
   0xd   :  { %1386 = vmatpush3.bf16.msra.mxu0 %v1559_v11  ;;  %1296 = vmatprep.mubr.msk.f32.mxu0 %vm43_vm0, %v26_v63  ;;  %v29_v63 = vld [vmem:[%s1800_s0 + $0x28] sm:$0xff] }
   0xe   :  { %1390 = vmatprep.subr.bf16.mxu0 %v1497_v3 }
  0x10   :  { %1297 = vmatmul.mubr.msk.f32.gmra.mrb[2].mxu0 %vm43_vm0, %v27_v0 }
  0xdd   :  { %v256_v15 = vpop.f32.mrb[0].mxu1 }
  0xde   :  { %v1311_v16 = vpop.f32.mrb[1].mxu1 }
  0xdf   :  { %v1295_v17 = vpop.f32.mrb[0].mxu0 }
  0xe0   :  { %v140_v18 = vadd.f32 %v1295_v17, %v1578_v14  ;;  %v134_v19 = vpop.f32.mrb[1].mxu0 }
  0xe1   :  { %v135_v20 = vadd.f32 %v1578_v14, %v134_v19 }
  0xe2   :  { %175 = vst.msk [vmem:[#allocation2 + $0x8] sm:$0xff] %vm173_vm3, %v140_v18 }
  0xe3   :  { %174 = vst.msk [vmem:[#allocation2] sm:$0xff] %vm173_vm3, %v135_v20  ;;  %v1298_v7 = vpop.f32.mrb[2].mxu0 }
  0xe4   :  { %v150_v8 = vadd.f32 %v1298_v7, %v1578_v14  ;;  %v144_v9 = vpop.f32.mrb[3].mxu0 }
  0xe5   :  { %v145_v10 = vadd.f32 %v1578_v14, %v144_v9 }
  0xe6   :  { %177 = vst.msk [vmem:[#allocation2 + $0x18] sm:$0xff] %vm173_vm3, %v150_v8 }
  0xe7   :  { %176 = vst.msk [vmem:[#allocation2 + $0x10] sm:$0xff] %vm173_vm3, %v145_v10 }
  0xe9   :  { %v302_v47 = vld [vmem:[#allocation2 + $0x8] sm:$0xff] }
  0xea   :  { %v182_v21 = vld [vmem:[#allocation2] sm:$0xff] }
  0xeb   :  { %v260_v22 = vadd.f32 %v256_v15, %v182_v21 }
  0xed   :  { %1401 = vtanh.f32 %v260_v22  ;;  %v1219_v25 = vmul.f32 -1.442695, %v260_v22 }
  0xee   :  { %v422_v20 = vld [vmem:[#allocation2 + $0x10] sm:$0xff] }
  0xef   :  { %1403 = vpow2.f32 %v1219_v25 }
  0xf7   :  { %v1402_v23 = vpop.eup %1401 }
  0xf8   :  { %275 = vrot.lane.b32.xlu0 %v1402_v23, %s1500_s5 }
  0xf9   :  { %v1404_v26 = vpop.eup %1403 }
  0xfa   :  { %v264_v27 = vadd.f32 1.0, %v1404_v26 }
  0xfc   :  { %270 = vrot.lane.b32.xlu0 %v268_v24, %s1501_s3  ;;  %1405 = vrcp.f32 %v264_v27 }
 0x106   :  { %v1406_v28 = vpop.eup %1405 }
 0x16a   :  { %v276_v29 = vpop.permute.xlu0 %275 }
 0x16b   :  { %v278_v30 = vmul.f32 %v1406_v28, %v276_v29 }
 0x16d   :  { %280 = vrot.lane.b32.xlu1 %v278_v30, %s1501_s3 }
 0x16e   :  { %v271_v31 = vpop.permute.xlu0 %270 }
 0x16f   :  { %v273_v32 = vmul.f32 %v1406_v28, %v271_v31 }
 0x1df   :  { %v281_v33 = vpop.permute.xlu1 %280 }
 0x1e0   :  { %v283_v34 = vadd.f32 %v281_v33, %v273_v32 }
 0x1e2   :  { %1407 = vtanh.f32 %v283_v34 }
 0x1ec   :  { %v1408_v35 = vpop.eup %1407 }
 0x1ed   :  { %286 = vrot.lane.b32.xlu1 %v1408_v35, %s1502_s6 }
 0x1f1   :  { %291 = vrot.lane.b32.xlu1 %v283_v34, %s1503_s7 }
 0x25f   :  { %v287_v36 = vpop.permute.xlu1 %286 }
 0x260   :  { %v289_v37 = vmul.f32 %v1406_v28, %v287_v36 }
 0x262   :  { %296 = vrot.lane.b32.xlu0 %v289_v37, %s1504_s8 }
 0x263   :  { %v292_v38 = vpop.permute.xlu1 %291 }
 0x264   :  { %294 = vst.msk [vmem:[#allocation4] sm:$0xff] %vm21_vm2, %v292_v38 }
 0x26b   :  { %v387_v39 = vld [vmem:[#allocation4] sm:$0xff] }
 0x26c   :  { %389 = vrot.lane.b32.xlu1 %v387_v39, %s1501_s3 }
 0x2d4   :  { %v297_v40 = vpop.permute.xlu0 %296 }
 0x2d5   :  { %299 = vst.msk [vmem:[#allocation3] sm:$0xff] %vm21_vm2, %v297_v40  ;;  %300 = vst.msk [vmem:[%s1803_s4] sm:$0xff] %vm21_vm2, %v297_v40 }
 0x2dc   :  { %v1141_v41 = vld [vmem:[%s1803_s4] sm:$0xff] }
 0x2dd   :  { %v303_v42 = vld [vmem:[#allocation3] sm:$0xff]  ;;  %v1241_v43 = vmul.f32 -1.442695, %v1141_v41 }
 0x2de   :  { %1317 = vmatmul.mubr.msk.f32.vlgmr.msra.gmra.mrb[2].mxu1 %vm21_vm2, %v303_v42  ;;  %v390_v58 = vpop.permute.xlu1 %389 }
 0x2df   :  { %1377 = vmatpush3.bf16.msra.mxu1 %v1559_v11  ;;  %1323 = vmatprep.mubr.msk.f32.mxu1 %vm1498_vm1, %v1499_v4  ;;  %1409 = vpow2.f32 %v1241_v43 }
 0x2e0   :  { %1378 = vmatprep.subr.bf16.mxu1 %v1497_v3 }
 0x2e9   :  { %v1410_v44 = vpop.eup %1409 }
 0x2ea   :  { %v1173_v45 = vadd.f32 1.0, %v1410_v44 }
 0x2ec   :  { %1411 = vrcp.f32 %v1173_v45 }
 0x2f6   :  { %v1412_v46 = vpop.eup %1411 }
 0x2f7   :  { %1197 = vst.msk [vmem:[%s1803_s4] sm:$0xff] %vm21_vm2, %v1412_v46 }
 0x3b1   :  { %v375_v48 = vpop.f32.mrb[2].mxu1 }
 0x3b2   :  { %v379_v49 = vadd.f32 %v375_v48, %v302_v47  ;;  %v1318_v50 = vpop.f32.mrb[3].mxu1  ;;  %v542_v47 = vld [vmem:[#allocation2 + $0x18] sm:$0xff] }
 0x3b4   :  { %1413 = vtanh.f32 %v379_v49  ;;  %v1221_v52 = vmul.f32 -1.442695, %v379_v49 }
 0x3b6   :  { %1415 = vpow2.f32 %v1221_v52 }
 0x3be   :  { %v1414_v51 = vpop.eup %1413 }
 0x3bf   :  { %394 = vrot.lane.b32.xlu0 %v1414_v51, %s1500_s5 }
 0x3c0   :  { %v1416_v53 = vpop.eup %1415 }
 0x3c1   :  { %v383_v54 = vadd.f32 1.0, %v1416_v53 }
 0x3c3   :  { %1417 = vrcp.f32 %v383_v54 }
 0x3cd   :  { %v1418_v55 = vpop.eup %1417 }
 0x3ce   :  { %v392_v59 = vmul.f32 %v1418_v55, %v390_v58 }
 0x431   :  { %v395_v56 = vpop.permute.xlu0 %394 }
 0x432   :  { %v397_v57 = vmul.f32 %v1418_v55, %v395_v56 }
 0x434   :  { %399 = vrot.lane.b32.xlu0 %v397_v57, %s1501_s3 }
 0x4a6   :  { %v400_v60 = vpop.permute.xlu0 %399 }
 0x4a7   :  { %v402_v61 = vadd.f32 %v400_v60, %v392_v59 }
 0x4a9   :  { %1419 = vtanh.f32 %v402_v61 }
 0x4b3   :  { %v1420_v62 = vpop.eup %1419 }
 0x4b4   :  { %405 = vrot.lane.b32.xlu1 %v1420_v62, %s1502_s6  ;;  %v28_v62 = vld [vmem:[%s1800_s0 + $0x20] sm:$0xff] }
 0x4b5   :  { %1299 = vmatprep.mubr.msk.f32.mxu0 %vm43_vm0, %v28_v62 }
 0x4b6   :  { %1300 = vmatmul.mubr.msk.f32.gmra.mrb[4].mxu0 %vm43_vm0, %v29_v63 }
 0x4b8   :  { %410 = vrot.lane.b32.xlu1 %v402_v61, %s1503_s7 }
 0x526   :  { %v406_v1 = vpop.permute.xlu1 %405 }
 0x527   :  { %v408_v2 = vmul.f32 %v1418_v55, %v406_v1 }
 0x529   :  { %415 = vrot.lane.b32.xlu0 %v408_v2, %s1504_s8 }
 0x52a   :  { %v411_v5 = vpop.permute.xlu1 %410 }
 0x52b   :  { %413 = vst.msk [vmem:[#allocation4] sm:$0xff] %vm21_vm2, %v411_v5 }
 0x532   :  { %v507_v6 = vld [vmem:[#allocation4] sm:$0xff] }
 0x533   :  { %509 = vrot.lane.b32.xlu1 %v507_v6, %s1501_s3 }
 0x589   :  { %v1301_v6 = vpop.f32.mrb[4].mxu0 }
 0x58a   :  { %v160_v7 = vadd.f32 %v1301_v6, %v1578_v14  ;;  %v154_v8 = vpop.f32.mrb[5].mxu0 }
 0x58b   :  { %v155_v9 = vadd.f32 %v1578_v14, %v154_v8 }
 0x58c   :  { %179 = vst.msk [vmem:[#allocation2 + $0x28] sm:$0xff] %vm173_vm3, %v160_v7 }
 0x58d   :  { %178 = vst.msk [vmem:[#allocation2 + $0x20] sm:$0xff] %vm173_vm3, %v155_v9 }
 0x59b   :  { %v416_v12 = vpop.permute.xlu0 %415 }
 0x59c   :  { %418 = vst.msk [vmem:[#allocation3] sm:$0xff] %vm21_vm2, %v416_v12  ;;  %1222 = vst.msk [vmem:[%s1803_s4 + $0x8] sm:$0xff] %vm21_vm2, %v416_v12 }
 0x5a3   :  { %v1142_v13 = vld [vmem:[%s1803_s4 + $0x8] sm:$0xff]  ;;  %v423_v15 = vld [vmem:[#allocation3] sm:$0xff] }
 0x5a4   :  { %v1242_v16 = vmul.f32 -1.442695, %v1142_v13  ;;  %1324 = vmatmul.mubr.msk.f32.vlgmr.msra.gmra.mrb[4].mxu1 %vm21_vm2, %v423_v15 }
 0x5a5   :  { %1380 = vmatpush3.bf16.msra.mxu1 %v1559_v11  ;;  %1330 = vmatprep.mubr.msk.f32.mxu1 %vm1498_vm1, %v1499_v4  ;;  %v510_v31 = vpop.permute.xlu1 %509 }
 0x5a6   :  { %1421 = vpow2.f32 %v1242_v16  ;;  %1381 = vmatprep.subr.bf16.mxu1 %v1497_v3 }
 0x5b0   :  { %v1422_v17 = vpop.eup %1421 }
 0x5b1   :  { %v1174_v18 = vadd.f32 1.0, %v1422_v17 }
 0x5b3   :  { %1423 = vrcp.f32 %v1174_v18 }
 0x5bd   :  { %v1424_v19 = vpop.eup %1423 }
 0x5be   :  { %1198 = vst.msk [vmem:[%s1803_s4 + $0x8] sm:$0xff] %vm21_vm2, %v1424_v19  ;;  %v662_v19 = vld [vmem:[#allocation2 + $0x20] sm:$0xff] }
 0x677   :  { %v495_v21 = vpop.f32.mrb[4].mxu1 }
 0x678   :  { %v499_v22 = vadd.f32 %v495_v21, %v422_v20  ;;  %v1325_v23 = vpop.f32.mrb[5].mxu1 }
 0x67a   :  { %1425 = vtanh.f32 %v499_v22  ;;  %v1224_v25 = vmul.f32 -1.442695, %v499_v22 }
 0x67c   :  { %1427 = vpow2.f32 %v1224_v25 }
 0x684   :  { %v1426_v24 = vpop.eup %1425 }
 0x685   :  { %514 = vrot.lane.b32.xlu0 %v1426_v24, %s1500_s5 }
 0x686   :  { %v1428_v26 = vpop.eup %1427 }
 0x687   :  { %v503_v27 = vadd.f32 1.0, %v1428_v26 }
 0x689   :  { %1429 = vrcp.f32 %v503_v27 }
 0x693   :  { %v1430_v28 = vpop.eup %1429 }
 0x694   :  { %v512_v32 = vmul.f32 %v1430_v28, %v510_v31 }
 0x6f7   :  { %v515_v29 = vpop.permute.xlu0 %514 }
 0x6f8   :  { %v517_v30 = vmul.f32 %v1430_v28, %v515_v29 }
 0x6fa   :  { %519 = vrot.lane.b32.xlu0 %v517_v30, %s1501_s3 }
 0x76c   :  { %v520_v33 = vpop.permute.xlu0 %519 }
 0x76d   :  { %v522_v34 = vadd.f32 %v520_v33, %v512_v32 }
 0x76f   :  { %1431 = vtanh.f32 %v522_v34 }
 0x779   :  { %v1432_v35 = vpop.eup %1431 }
 0x77a   :  { %525 = vrot.lane.b32.xlu1 %v1432_v35, %s1502_s6  ;;  %v30_v35 = vld [vmem:[%s1800_s0 + $0x30] sm:$0xff] }
 0x77b   :  { %1302 = vmatprep.mubr.msk.f32.mxu0 %vm43_vm0, %v30_v35 }
 0x77e   :  { %530 = vrot.lane.b32.xlu1 %v522_v34, %s1503_s7 }
 0x7ec   :  { %v526_v36 = vpop.permute.xlu1 %525 }
 0x7ed   :  { %v528_v37 = vmul.f32 %v1430_v28, %v526_v36  ;;  %v31_v36 = vld [vmem:[%s1800_s0 + $0x38] sm:$0xff] }
 0x7ee   :  { %1303 = vmatmul.mubr.msk.f32.gmra.mrb[6].mxu0 %vm43_vm0, %v31_v36 }
 0x7ef   :  { %535 = vrot.lane.b32.xlu0 %v528_v37, %s1504_s8  ;;  %1344 = vmatprep.mubr.msk.f32.mxu0 %vm1498_vm1, %v1499_v4 }
 0x7f0   :  { %v531_v38 = vpop.permute.xlu1 %530 }
 0x7f1   :  { %533 = vst.msk [vmem:[#allocation4] sm:$0xff] %vm21_vm2, %v531_v38 }
 0x7f8   :  { %v627_v39 = vld [vmem:[#allocation4] sm:$0xff] }
 0x7f9   :  { %629 = vrot.lane.b32.xlu1 %v627_v39, %s1501_s3 }
 0x861   :  { %v536_v40 = vpop.permute.xlu0 %535 }
 0x862   :  { %538 = vst.msk [vmem:[#allocation3] sm:$0xff] %vm21_vm2, %v536_v40  ;;  %1225 = vst.msk [vmem:[%s1803_s4 + $0x10] sm:$0xff] %vm21_vm2, %v536_v40 }
 0x869   :  { %v1143_v41 = vld [vmem:[%s1803_s4 + $0x10] sm:$0xff]  ;;  %v543_v42 = vld [vmem:[#allocation3] sm:$0xff] }
 0x86a   :  { %v1243_v43 = vmul.f32 -1.442695, %v1143_v41  ;;  %1331 = vmatmul.mubr.msk.f32.vlgmr.msra.gmra.mrb[6].mxu1 %vm21_vm2, %v543_v42 }
 0x86b   :  { %1383 = vmatpush3.bf16.msra.mxu1 %v1559_v11  ;;  %1337 = vmatprep.mubr.msk.f32.mxu1 %vm1498_vm1, %v1499_v4  ;;  %v630_v57 = vpop.permute.xlu1 %629 }
 0x86c   :  { %1433 = vpow2.f32 %v1243_v43  ;;  %1387 = vmatprep.subr.bf16.mxu1 %v1497_v3 }
 0x876   :  { %v1434_v44 = vpop.eup %1433 }
 0x877   :  { %v1175_v45 = vadd.f32 1.0, %v1434_v44 }
 0x879   :  { %1435 = vrcp.f32 %v1175_v45 }
 0x883   :  { %v1436_v46 = vpop.eup %1435 }
 0x884   :  { %1199 = vst.msk [vmem:[%s1803_s4 + $0x10] sm:$0xff] %vm21_vm2, %v1436_v46 }
 0x93d   :  { %v615_v48 = vpop.f32.mrb[6].mxu1 }
 0x93e   :  { %v619_v49 = vadd.f32 %v615_v48, %v542_v47  ;;  %v1332_v50 = vpop.f32.mrb[7].mxu1  ;;  %v1304_v48 = vpop.f32.mrb[6].mxu0 }
 0x93f   :  { %v164_v50 = vpop.f32.mrb[7].mxu0 }
 0x940   :  { %1437 = vtanh.f32 %v619_v49  ;;  %v1227_v52 = vmul.f32 -1.442695, %v619_v49  ;;  %v170_v49 = vadd.f32 %v1304_v48, %v1578_v14 }
 0x942   :  { %1439 = vpow2.f32 %v1227_v52  ;;  %181 = vst.msk [vmem:[#allocation2 + $0x38] sm:$0xff] %vm173_vm3, %v170_v49 }
 0x94a   :  { %v1438_v51 = vpop.eup %1437 }
 0x94b   :  { %634 = vrot.lane.b32.xlu0 %v1438_v51, %s1500_s5  ;;  %v165_v51 = vadd.f32 %v1578_v14, %v164_v50 }
 0x94c   :  { %v1440_v3 = vpop.eup %1439 }
 0x94d   :  { %v623_v53 = vadd.f32 1.0, %v1440_v3  ;;  %180 = vst.msk [vmem:[#allocation2 + $0x30] sm:$0xff] %vm173_vm3, %v165_v51 }
 0x94f   :  { %1441 = vrcp.f32 %v623_v53 }
 0x959   :  { %v1442_v54 = vpop.eup %1441 }
 0x95a   :  { %v632_v58 = vmul.f32 %v1442_v54, %v630_v57 }
 0x9bd   :  { %v635_v55 = vpop.permute.xlu0 %634 }
 0x9be   :  { %v637_v56 = vmul.f32 %v1442_v54, %v635_v55 }
 0x9c0   :  { %639 = vrot.lane.b32.xlu0 %v637_v56, %s1501_s3 }
 0xa32   :  { %v640_v59 = vpop.permute.xlu0 %639 }
 0xa33   :  { %v642_v60 = vadd.f32 %v640_v59, %v632_v58 }
 0xa35   :  { %1443 = vtanh.f32 %v642_v60 }
 0xa3f   :  { %v1444_v61 = vpop.eup %1443 }
 0xa40   :  { %645 = vrot.lane.b32.xlu1 %v1444_v61, %s1502_s6 }
 0xa44   :  { %650 = vrot.lane.b32.xlu1 %v642_v60, %s1503_s7 }
 0xab2   :  { %v646_v0 = vpop.permute.xlu1 %645 }
 0xab3   :  { %v648_v1 = vmul.f32 %v1442_v54, %v646_v0 }
 0xab5   :  { %655 = vrot.lane.b32.xlu0 %v648_v1, %s1504_s8 }
 0xab6   :  { %v651_v2 = vpop.permute.xlu1 %650 }
 0xab7   :  { %653 = vst.msk [vmem:[#allocation4] sm:$0xff] %vm21_vm2, %v651_v2 }
 0xabe   :  { %v747_v5 = vld [vmem:[#allocation4] sm:$0xff] }
 0xabf   :  { %749 = vrot.lane.b32.xlu1 %v747_v5, %s1501_s3 }
 0xb27   :  { %v656_v10 = vpop.permute.xlu0 %655 }
 0xb28   :  { %658 = vst.msk [vmem:[#allocation3] sm:$0xff] %vm21_vm2, %v656_v10  ;;  %1228 = vst.msk [vmem:[%s1803_s4 + $0x18] sm:$0xff] %vm21_vm2, %v656_v10 }
 0xb2f   :  { %v1144_v12 = vld [vmem:[%s1803_s4 + $0x18] sm:$0xff]  ;;  %v663_v13 = vld [vmem:[#allocation3] sm:$0xff] }
 0xb30   :  { %v1244_v15 = vmul.f32 -1.442695, %v1144_v12  ;;  %1338 = vmatmul.mubr.msk.f32.vlgmr.msra.gmra.mrb[8].mxu1 %vm21_vm2, %v663_v13 }
 0xb31   :  { %1389 = vmatpush3.bf16.msra.mxu1 %v1559_v11  ;;  %1351 = vmatprep.mubr.msk.f32.mxu1 %vm1498_vm1, %v1499_v4  ;;  %v750_v30 = vpop.permute.xlu1 %749 }
 0xb32   :  { %1445 = vpow2.f32 %v1244_v15  ;;  %v902_v15 = vld [vmem:[#allocation2 + $0x30] sm:$0xff] }
 0xb3c   :  { %v1446_v16 = vpop.eup %1445 }
 0xb3d   :  { %v1176_v17 = vadd.f32 1.0, %v1446_v16 }
 0xb3f   :  { %1447 = vrcp.f32 %v1176_v17 }
 0xb49   :  { %v1448_v18 = vpop.eup %1447 }
 0xb4a   :  { %1200 = vst.msk [vmem:[%s1803_s4 + $0x18] sm:$0xff] %vm21_vm2, %v1448_v18 }
 0xc03   :  { %v735_v20 = vpop.f32.mrb[8].mxu1 }
 0xc04   :  { %v739_v21 = vadd.f32 %v735_v20, %v662_v19  ;;  %v1339_v22 = vpop.f32.mrb[9].mxu1 }
 0xc06   :  { %1449 = vtanh.f32 %v739_v21  ;;  %v1230_v24 = vmul.f32 -1.442695, %v739_v21 }
 0xc08   :  { %1451 = vpow2.f32 %v1230_v24 }
 0xc10   :  { %v1450_v23 = vpop.eup %1449 }
 0xc11   :  { %754 = vrot.lane.b32.xlu0 %v1450_v23, %s1500_s5 }
 0xc12   :  { %v1452_v25 = vpop.eup %1451 }
 0xc13   :  { %v743_v26 = vadd.f32 1.0, %v1452_v25 }
 0xc15   :  { %1453 = vrcp.f32 %v743_v26 }
 0xc1f   :  { %v1454_v27 = vpop.eup %1453 }
 0xc20   :  { %v752_v31 = vmul.f32 %v1454_v27, %v750_v30 }
 0xc83   :  { %v755_v28 = vpop.permute.xlu0 %754 }
 0xc84   :  { %v757_v29 = vmul.f32 %v1454_v27, %v755_v28 }
 0xc86   :  { %759 = vrot.lane.b32.xlu0 %v757_v29, %s1501_s3 }
 0xcf8   :  { %v760_v32 = vpop.permute.xlu0 %759 }
 0xcf9   :  { %v762_v33 = vadd.f32 %v760_v32, %v752_v31 }
 0xcfb   :  { %1455 = vtanh.f32 %v762_v33 }
 0xd05   :  { %v1456_v34 = vpop.eup %1455 }
 0xd06   :  { %765 = vrot.lane.b32.xlu1 %v1456_v34, %s1502_s6 }
 0xd0a   :  { %770 = vrot.lane.b32.xlu1 %v762_v33, %s1503_s7 }
 0xd78   :  { %v766_v37 = vpop.permute.xlu1 %765 }
 0xd79   :  { %v768_v38 = vmul.f32 %v1454_v27, %v766_v37 }
 0xd7b   :  { %775 = vrot.lane.b32.xlu0 %v768_v38, %s1504_s8 }
 0xd7c   :  { %v771_v39 = vpop.permute.xlu1 %770 }
 0xd7d   :  { %773 = vst.msk [vmem:[#allocation4] sm:$0xff] %vm21_vm2, %v771_v39 }
 0xd84   :  { %v867_v40 = vld [vmem:[#allocation4] sm:$0xff] }
 0xd85   :  { %869 = vrot.lane.b32.xlu1 %v867_v40, %s1501_s3 }
 0xded   :  { %v776_v41 = vpop.permute.xlu0 %775 }
 0xdee   :  { %778 = vst.msk [vmem:[#allocation3] sm:$0xff] %vm21_vm2, %v776_v41  ;;  %1231 = vst.msk [vmem:[%s1803_s4 + $0x20] sm:$0xff] %vm21_vm2, %v776_v41 }
 0xdf5   :  { %v1145_v42 = vld [vmem:[%s1803_s4 + $0x20] sm:$0xff] }
 0xdf6   :  { %v783_v43 = vld [vmem:[#allocation3] sm:$0xff]  ;;  %v1245_v44 = vmul.f32 -1.442695, %v1145_v42  ;;  %v1022_v42 = vld [vmem:[#allocation2 + $0x38] sm:$0xff] }
 0xdf7   :  { %1345 = vmatmul.mubr.msk.f32.vlgmr.msra.gmra.mrb[8].mxu0 %vm21_vm2, %v783_v43  ;;  %v870_v59 = vpop.permute.xlu1 %869 }
 0xdf8   :  { %1392 = vmatpush3.bf16.msra.mxu0 %v1559_v11  ;;  %1358 = vmatprep.mubr.msk.f32.mxu0 %vm1498_vm1, %v1499_v4  ;;  %1457 = vpow2.f32 %v1245_v44  ;;  %v782_v4 = vld [vmem:[#allocation2 + $0x28] sm:$0xff] }
 0xe02   :  { %v1458_v45 = vpop.eup %1457 }
 0xe03   :  { %v1177_v46 = vadd.f32 1.0, %v1458_v45 }
 0xe05   :  { %1459 = vrcp.f32 %v1177_v46 }
 0xe0f   :  { %v1460_v47 = vpop.eup %1459 }
 0xe10   :  { %1201 = vst.msk [vmem:[%s1803_s4 + $0x20] sm:$0xff] %vm21_vm2, %v1460_v47 }
 0xeca   :  { %v855_v11 = vpop.f32.mrb[8].mxu0 }
 0xecb   :  { %v859_v52 = vadd.f32 %v855_v11, %v782_v4  ;;  %v1346_v3 = vpop.f32.mrb[9].mxu0 }
 0xecd   :  { %1461 = vtanh.f32 %v859_v52  ;;  %v1233_v54 = vmul.f32 -1.442695, %v859_v52 }
 0xecf   :  { %1463 = vpow2.f32 %v1233_v54 }
 0xed7   :  { %v1462_v53 = vpop.eup %1461 }
 0xed8   :  { %874 = vrot.lane.b32.xlu0 %v1462_v53, %s1500_s5 }
 0xed9   :  { %v1464_v55 = vpop.eup %1463 }
 0xeda   :  { %v863_v56 = vadd.f32 1.0, %v1464_v55 }
 0xedc   :  { %1465 = vrcp.f32 %v863_v56 }
 0xee6   :  { %v1466_v57 = vpop.eup %1465 }
 0xee7   :  { %v872_v60 = vmul.f32 %v1466_v57, %v870_v59 }
 0xf4a   :  { %v875_v58 = vpop.permute.xlu0 %874 }
 0xf4b   :  { %v877_v14 = vmul.f32 %v1466_v57, %v875_v58 }
 0xf4d   :  { %879 = vrot.lane.b32.xlu0 %v877_v14, %s1501_s3 }
 0xfbf   :  { %v880_v61 = vpop.permute.xlu0 %879 }
 0xfc0   :  { %v882_v62 = vadd.f32 %v880_v61, %v872_v60 }
 0xfc2   :  { %1467 = vtanh.f32 %v882_v62 }
 0xfcc   :  { %v1468_v63 = vpop.eup %1467 }
 0xfcd   :  { %885 = vrot.lane.b32.xlu1 %v1468_v63, %s1502_s6 }
 0xfd1   :  { %890 = vrot.lane.b32.xlu1 %v882_v62, %s1503_s7 }
0x103f   :  { %v886_v0 = vpop.permute.xlu1 %885 }
0x1040   :  { %v888_v1 = vmul.f32 %v1466_v57, %v886_v0 }
0x1042   :  { %895 = vrot.lane.b32.xlu0 %v888_v1, %s1504_s8 }
0x1043   :  { %v891_v2 = vpop.permute.xlu1 %890 }
0x1044   :  { %893 = vst.msk [vmem:[#allocation4] sm:$0xff] %vm21_vm2, %v891_v2 }
0x104b   :  { %v987_v5 = vld [vmem:[#allocation4] sm:$0xff] }
0x104c   :  { %989 = vrot.lane.b32.xlu1 %v987_v5, %s1501_s3 }
0x10b4   :  { %v896_v6 = vpop.permute.xlu0 %895 }
0x10b5   :  { %898 = vst.msk [vmem:[#allocation3] sm:$0xff] %vm21_vm2, %v896_v6  ;;  %1234 = vst.msk [vmem:[%s1803_s4 + $0x28] sm:$0xff] %vm21_vm2, %v896_v6 }
0x10bc   :  { %v1146_v7 = vld [vmem:[%s1803_s4 + $0x28] sm:$0xff]  ;;  %v903_v8 = vld [vmem:[#allocation3] sm:$0xff] }
0x10bd   :  { %v1246_v9 = vmul.f32 -1.442695, %v1146_v7  ;;  %1352 = vmatmul.mubr.msk.f32.vlgmr.msra.gmra.mrb[10].mxu1 %vm21_vm2, %v903_v8 }
0x10be   :  { %v990_v26 = vpop.permute.xlu1 %989 }
0x10bf   :  { %1469 = vpow2.f32 %v1246_v9 }
0x10c9   :  { %v1470_v10 = vpop.eup %1469 }
0x10ca   :  { %v1178_v12 = vadd.f32 1.0, %v1470_v10 }
0x10cc   :  { %1471 = vrcp.f32 %v1178_v12 }
0x10d6   :  { %v1472_v13 = vpop.eup %1471 }
0x10d7   :  { %1202 = vst.msk [vmem:[%s1803_s4 + $0x28] sm:$0xff] %vm21_vm2, %v1472_v13 }
0x1190   :  { %v975_v16 = vpop.f32.mrb[10].mxu1 }
0x1191   :  { %v979_v17 = vadd.f32 %v975_v16, %v902_v15  ;;  %v1353_v18 = vpop.f32.mrb[11].mxu1 }
0x1193   :  { %1473 = vtanh.f32 %v979_v17  ;;  %v1236_v20 = vmul.f32 -1.442695, %v979_v17 }
0x1195   :  { %1475 = vpow2.f32 %v1236_v20 }
0x119d   :  { %v1474_v19 = vpop.eup %1473 }
0x119e   :  { %994 = vrot.lane.b32.xlu0 %v1474_v19, %s1500_s5 }
0x119f   :  { %v1476_v21 = vpop.eup %1475 }
0x11a0   :  { %v983_v22 = vadd.f32 1.0, %v1476_v21 }
0x11a2   :  { %1477 = vrcp.f32 %v983_v22 }
0x11ac   :  { %v1478_v23 = vpop.eup %1477 }
0x11ad   :  { %v992_v27 = vmul.f32 %v1478_v23, %v990_v26 }
0x1210   :  { %v995_v24 = vpop.permute.xlu0 %994 }
0x1211   :  { %v997_v25 = vmul.f32 %v1478_v23, %v995_v24 }
0x1213   :  { %999 = vrot.lane.b32.xlu0 %v997_v25, %s1501_s3 }
0x1285   :  { %v1000_v28 = vpop.permute.xlu0 %999 }
0x1286   :  { %v1002_v29 = vadd.f32 %v1000_v28, %v992_v27 }
0x1288   :  { %1479 = vtanh.f32 %v1002_v29 }
0x1292   :  { %v1480_v30 = vpop.eup %1479 }
0x1293   :  { %1005 = vrot.lane.b32.xlu1 %v1480_v30, %s1502_s6 }
0x1297   :  { %1010 = vrot.lane.b32.xlu1 %v1002_v29, %s1503_s7 }
0x1305   :  { %v1006_v31 = vpop.permute.xlu1 %1005 }
0x1306   :  { %v1008_v32 = vmul.f32 %v1478_v23, %v1006_v31 }
0x1308   :  { %1015 = vrot.lane.b32.xlu0 %v1008_v32, %s1504_s8 }
0x1309   :  { %v1011_v33 = vpop.permute.xlu1 %1010 }
0x130a   :  { %1013 = vst.msk [vmem:[#allocation4] sm:$0xff] %vm21_vm2, %v1011_v33 }
0x1311   :  { %v1107_v34 = vld [vmem:[#allocation4] sm:$0xff] }
0x1312   :  { %1109 = vrot.lane.b32.xlu1 %v1107_v34, %s1501_s3 }
0x137a   :  { %v1016_v35 = vpop.permute.xlu0 %1015 }
0x137b   :  { %1018 = vst.msk [vmem:[#allocation3] sm:$0xff] %vm21_vm2, %v1016_v35  ;;  %1237 = vst.msk [vmem:[%s1803_s4 + $0x30] sm:$0xff] %vm21_vm2, %v1016_v35 }
0x1382   :  { %v1147_v36 = vld [vmem:[%s1803_s4 + $0x30] sm:$0xff]  ;;  %v1023_v37 = vld [vmem:[#allocation3] sm:$0xff] }
0x1383   :  { %v1247_v38 = vmul.f32 -1.442695, %v1147_v36  ;;  %1359 = vmatmul.mubr.msk.f32.vlgmr.msra.gmra.mrb[10].mxu0 %vm21_vm2, %v1023_v37 }
0x1384   :  { %v1110_v11 = vpop.permute.xlu1 %1109 }
0x1385   :  { %1481 = vpow2.f32 %v1247_v38 }
0x138f   :  { %v1482_v39 = vpop.eup %1481 }
0x1390   :  { %v1179_v40 = vadd.f32 1.0, %v1482_v39 }
0x1392   :  { %1483 = vrcp.f32 %v1179_v40 }
0x139c   :  { %v1484_v41 = vpop.eup %1483 }
0x139d   :  { %1203 = vst.msk [vmem:[%s1803_s4 + $0x30] sm:$0xff] %vm21_vm2, %v1484_v41 }
0x1456   :  { %v1095_v43 = vpop.f32.mrb[10].mxu0 }
0x1457   :  { %v1099_v44 = vadd.f32 %v1095_v43, %v1022_v42  ;;  %v1360_v45 = vpop.f32.mrb[11].mxu0 }
0x1459   :  { %1485 = vtanh.f32 %v1099_v44  ;;  %v1239_v47 = vmul.f32 -1.442695, %v1099_v44 }
0x145b   :  { %1487 = vpow2.f32 %v1239_v47 }
0x1463   :  { %v1486_v46 = vpop.eup %1485 }
0x1464   :  { %1114 = vrot.lane.b32.xlu0 %v1486_v46, %s1500_s5 }
0x1465   :  { %v1488_v48 = vpop.eup %1487 }
0x1466   :  { %v1103_v49 = vadd.f32 1.0, %v1488_v48 }
0x1468   :  { %1489 = vrcp.f32 %v1103_v49 }
0x1472   :  { %v1490_v50 = vpop.eup %1489 }
0x1473   :  { %v1112_v52 = vmul.f32 %v1490_v50, %v1110_v11 }
0x14d6   :  { %v1115_v51 = vpop.permute.xlu0 %1114 }
0x14d7   :  { %v1117_v4 = vmul.f32 %v1490_v50, %v1115_v51 }
0x14d9   :  { %1119 = vrot.lane.b32.xlu0 %v1117_v4, %s1501_s3 }
0x154b   :  { %v1120_v3 = vpop.permute.xlu0 %1119 }
0x154c   :  { %v1122_v53 = vadd.f32 %v1120_v3, %v1112_v52 }
0x154e   :  { %1491 = vtanh.f32 %v1122_v53 }
0x1558   :  { %v1492_v54 = vpop.eup %1491 }
0x1559   :  { %1125 = vrot.lane.b32.xlu1 %v1492_v54, %s1502_s6 }
0x155d   :  { %1130 = vrot.lane.b32.xlu1 %v1122_v53, %s1503_s7 }
0x15cb   :  { %v1126_v55 = vpop.permute.xlu1 %1125 }
0x15cc   :  { %v1128_v56 = vmul.f32 %v1490_v50, %v1126_v55 }
0x15ce   :  { %1135 = vrot.lane.b32.xlu0 %v1128_v56, %s1504_s8 }
0x15cf   :  { %v1131_v57 = vpop.permute.xlu1 %1130 }
0x15d0   :  { %1133 = vst.msk [vmem:[#allocation4] sm:$0xff] %vm21_vm2, %v1131_v57 }
0x1640   :  { %v1136_v58 = vpop.permute.xlu0 %1135 }
0x1641   :  { %1138 = vst.msk [vmem:[#allocation3] sm:$0xff] %vm21_vm2, %v1136_v58  ;;  %1240 = vst.msk [vmem:[%s1803_s4 + $0x38] sm:$0xff] %vm21_vm2, %v1136_v58 }
0x1648   :  { %v1148_v14 = vld [vmem:[%s1803_s4 + $0x38] sm:$0xff] }
0x1649   :  { %v1248_v59 = vmul.f32 -1.442695, %v1148_v14 }
0x164b   :  { %1493 = vpow2.f32 %v1248_v59 }
0x1655   :  { %v1494_v60 = vpop.eup %1493 }
0x1656   :  { %v1180_v61 = vadd.f32 1.0, %v1494_v60 }
0x1658   :  { %1495 = vrcp.f32 %v1180_v61 }
0x1662   :  { %v1496_v62 = vpop.eup %1495 }
0x1663   :  { %1204 = vst.msk [vmem:[%s1803_s4 + $0x38] sm:$0xff] %vm21_vm2, %v1496_v62 }

</bundles_post_ra>
